<compile_context>
chip_gen: v7x
topology: tpu7x:2x2x1
jax: 0.10.0
libtpu: 0.0.40
codegen_flags: <defaults>
</compile_context>

<pallas_src>
import functools

import jax
import jax.numpy as jnp
from jax import lax
from jax.experimental import pallas as pl
from jax.experimental.pallas import tpu as pltpu

ALPHA = 0.6   # fixed in the module
SMOOTH = 0.1  # unused in forward (kept for parity with __init__)


def _ols_kernel(outputs_ref, targets_ref, s_ref,
                loss_ref, s_t_out_ref, count_out_ref,
                loss_acc, *, alpha, inv_b, precise):
    i = pl.program_id(1)            # batch-tile step (reduction axis)
    n_i = pl.num_programs(1)

    x = outputs_ref[...].astype(jnp.float32)   # (TB, K) logits (bf16 in HBM ok)
    t = targets_ref[...].astype(jnp.float32)   # (TB, K) target distribution
    tb, k = x.shape

    # ---- softmax / log-softmax over the class (lane) axis ----
    m = jnp.max(x, axis=-1, keepdims=True)
    z = x - m
    ez = jnp.exp(z)
    denom = jnp.sum(ez, axis=-1, keepdims=True)
    log_sm = z - jnp.log(denom)                     # log_softmax(outputs, -1)
    if precise:
        prob = ez / denom                           # exact softmax
    else:
        # division -> EUP reciprocal (otherwise-idle slot); prob only feeds S_t
        prob = ez * pl.reciprocal(denom, approx=True)

    # ---- first-occurrence argmax along classes (torch-style tie break) ----
    lane_idx = lax.broadcasted_iota(jnp.int32, (tb, k), 1)

    def first_argmax(v, vmax):
        cand = jnp.where(v == vmax, lane_idx, k)
        return jnp.min(cand, axis=-1, keepdims=True)        # (TB, 1) int32

    tgt = first_argmax(t, jnp.max(t, axis=-1, keepdims=True))   # target_label
    pred = first_argmax(x, m)                # prediction (reuses softmax max)

    # ---- (K, TB) one-hot shared by the soft-CE matmul and the scatter ----
    tgt_row = jnp.transpose(tgt)                                # (1, TB)
    class_idx = lax.broadcasted_iota(jnp.int32, (k, tb), 0)     # classes on sublanes
    mxu_dtype = jnp.float32 if precise else jnp.bfloat16        # one-hot exact in bf16
    onehot_kb = (class_idx == tgt_row).astype(mxu_dtype)        # (K, TB)

    # ---- loss: alpha*CE(outputs,targets) + (1-alpha)*CE(outputs,S[tgt]) ----
    # Soft term reformulated as sum((onehot_kb @ log_sm) * S): contracts over
    # TB (keeps the MXU filled for K < 256) and reuses onehot_kb.
    ot_logsm = jnp.dot(onehot_kb, log_sm.astype(mxu_dtype),
                       preferred_element_type=jnp.float32)      # (K, K)
    ce_hard = jnp.sum(log_sm * t, keepdims=True)                # (1, 1)
    ce_soft = jnp.sum(ot_logsm * s_ref[...], keepdims=True)     # (1, 1)
    tile_loss = -(alpha * ce_hard + (1.0 - alpha) * ce_soft) * inv_b

    # ---- state-update deltas for this batch tile ----
    correct = (pred == tgt).astype(jnp.float32)                 # (TB, 1)
    masked_prob = prob * correct                                # (TB, K)
    s_t_add = jnp.dot(onehot_kb, masked_prob.astype(mxu_dtype),
                      preferred_element_type=jnp.float32)       # (K, K)
    # Exact counts, lane-dense (1, K): VPU mul + sublane reduce (no MXU).
    onehot_bk = (lane_idx == tgt).astype(jnp.float32)           # (TB, K)
    count_add = jnp.sum(onehot_bk * correct, axis=0, keepdims=True)   # (1, K)

    # ---- accumulate across batch tiles (outputs are pure deltas) ----
    @pl.when(i == 0)
    def _init():
        loss_acc[...] = jnp.zeros_like(loss_acc)
        s_t_out_ref[...] = jnp.zeros_like(s_t_out_ref)
        count_out_ref[...] = jnp.zeros_like(count_out_ref)

    loss_acc[...] += tile_loss
    s_t_out_ref[...] += s_t_add
    count_out_ref[...] += count_add

    @pl.when(i == n_i - 1)
    def _finalize():
        loss_ref[...] = loss_acc[...]       # single (1,1) store per core


def _vmem_need(tb, k, in_bytes):
    """Rough VMEM estimate (bytes) for one batch tile of size tb."""
    stream = 2 * tb * k * in_bytes             # logits + targets, double-buffered
    resident = 4 * k * k * 2                   # S (in) + S_t delta (out), single-buffered
    temps = 4 * (10 * tb * k + 3 * k * k)      # f32 temporaries incl. onehot_kb / ot_logsm / s_t_add
    small = 4 * (4 * k + 64)                   # count/loss blocks + scratch
    return stream + resident + temps + small


def _pick_block(bc, k, sub, in_bytes, budget):
    """Largest batch tile (multiple of `sub`, divisor of bc, <=2048) fitting the budget."""
    cands = sorted({d for d in range(sub, bc + 1, sub) if bc % d == 0} | {bc})
    best = cands[0]
    for d in cands:
        if d <= 2048 and _vmem_need(d, k, in_bytes) <= budget:
            best = d
    return best


@functools.partial(jax.jit, static_argnames=("alpha", "block_b", "num_splits", "precise"))
def online_label_smoothing_forward(outputs, targets, S, S_t, count, *,
                                   alpha=ALPHA, block_b=None, num_splits=1,
                                   precise=False):
    """Returns (loss, new_S_t, new_count) with the PyTorch forward semantics.

    num_splits: leading "parallel" grid axis (set 2 on v7x dual-TensorCore chips).
    precise:    True -> f32 MXU matmuls + exact divide; False -> bf16 MXU
                operands (one-hots exact) + approx reciprocal (fast path).
    """
    B, K = outputs.shape
    nc = int(num_splits)
    if B % nc != 0:
        raise ValueError("batch must be divisible by num_splits")
    Bc = B // nc

    bo = jnp.dtype(outputs.dtype).itemsize
    bt = jnp.dtype(targets.dtype).itemsize
    # sublane multiple of the *narrowest* streamed dtype (bf16 packs (16,128))
    sub = {4: 8, 2: 16, 1: 32}.get(min(bo, bt), 8)

    # Per-chip VMEM budget (v5e/v6e 128 MiB, v7x 64 MiB); conservative fallback.
    try:
        vmem_cap = int(pltpu.get_tpu_info().vmem_capacity_bytes)
    except Exception:
        vmem_cap = 64 * 2 ** 20
    budget = (vmem_cap * 7) // 10

    if block_b is None:
        block_b = _pick_block(Bc, K, sub, bo + bt, budget)
    else:
        block_b = int(block_b)
        if Bc % block_b != 0:
            raise ValueError("per-core batch must be divisible by block_b")
        if block_b != B and block_b % 8 != 0:
            raise ValueError("block_b must be a multiple of 8 sublanes (or the full batch)")
    nbp = Bc // block_b

    need = _vmem_need(block_b, K, bo + bt)
    vmem_limit = int(min(max(vmem_cap - (2 << 20), 16 << 20),
                         max(48 << 20, 2 * need)))

    S32 = S.astype(jnp.float32)
    kernel = functools.partial(_ols_kernel, alpha=float(alpha), inv_b=1.0 / B,
                               precise=bool(precise))

    loss_parts, s_t_delta, count_delta = pl.pallas_call(
        kernel,
        grid=(nc, nbp),
        in_specs=[
            pl.BlockSpec((block_b, K), lambda c, i: (c * nbp + i, 0)),    # logits (streamed)
            pl.BlockSpec((block_b, K), lambda c, i: (c * nbp + i, 0)),    # targets (streamed)
            pl.BlockSpec((K, K), lambda c, i: (0, 0),
                         pipeline_mode=pl.Buffered(1)),                   # S (resident, 1 buffer)
        ],
        out_specs=(
            pl.BlockSpec((None, 1, 1), lambda c, i: (c, 0, 0),
                         pipeline_mode=pl.Buffered(1)),                   # per-core loss
            pl.BlockSpec((None, K, K), lambda c, i: (c, 0, 0),
                         pipeline_mode=pl.Buffered(1)),                   # per-core S_t delta
            pl.BlockSpec((None, 1, K), lambda c, i: (c, 0, 0),
                         pipeline_mode=pl.Buffered(1)),                   # per-core count delta
        ),
        out_shape=(
            jax.ShapeDtypeStruct((nc, 1, 1), jnp.float32),
            jax.ShapeDtypeStruct((nc, K, K), jnp.float32),
            jax.ShapeDtypeStruct((nc, 1, K), jnp.float32),
        ),
        scratch_shapes=[pltpu.VMEM((1, 1), jnp.float32)],                 # loss accumulator
        compiler_params=pltpu.CompilerParams(
            dimension_semantics=("parallel", "arbitrary"),
            vmem_limit_bytes=vmem_limit,
        ),
    )(outputs, targets, S32)

    loss = jnp.sum(loss_parts)
    new_s_t = S_t.astype(jnp.float32) + jnp.sum(s_t_delta, axis=0)
    new_count = count.astype(jnp.float32) + jnp.reshape(
        jnp.sum(count_delta, axis=0), (K, 1))
    return loss, new_s_t, new_count


def _reference(outputs, targets, S, S_t, count, alpha=ALPHA):
    """Plain-JAX reference of the PyTorch forward (for correctness check)."""
    outputs = outputs.astype(jnp.float32)
    targets = targets.astype(jnp.float32)
    B, K = outputs.shape
    tgt = jnp.argmax(targets, axis=1)
    pred = jnp.argmax(outputs, axis=1)
    soft_targets = S[tgt]
    log_sm = jax.nn.log_softmax(outputs, axis=-1)
    ce_hard = -(log_sm * targets).sum() / B
    ce_soft = -(log_sm * soft_targets).sum() / B
    loss = alpha * ce_hard + (1 - alpha) * ce_soft
    prob = jax.nn.softmax(outputs, axis=1)
    correct = (pred == tgt).astype(jnp.float32)
    onehot = jax.nn.one_hot(tgt, K, dtype=jnp.float32)
    s_t_new = S_t + onehot.T @ (prob * correct[:, None])
    count_new = count + (onehot.T @ correct[:, None])
    return loss, s_t_new, count_new


if __name__ == "__main__":
    B, K = 64, 128          # small batch, smallest lane-aligned class count
    key = jax.random.PRNGKey(0)
    k1, k2 = jax.random.split(key)

    # bf16 logits / targets from HBM (halved DMA bytes); math is f32 in-kernel.
    outputs = jax.random.normal(k1, (B, K), dtype=jnp.float32).astype(jnp.bfloat16)
    rand_labels = jax.random.randint(k2, (B,), 0, K)
    # make ~half the predictions "correct" so the S_t / count update path is exercised
    pred_labels = jnp.argmax(outputs.astype(jnp.float32), axis=1)
    labels = jnp.where(jnp.arange(B) % 2 == 0, pred_labels, rand_labels)
    targets = jax.nn.one_hot(labels, K, dtype=jnp.bfloat16)

    # Deterministic state init, matching OnlineLabelSmoothing.__init__.
    S = jnp.ones((K, K), dtype=jnp.float32) / K
    S_t = jnp.zeros((K, K), dtype=jnp.float32)
    count = jnp.zeros((K, 1), dtype=jnp.float32)

    ref_loss, ref_s_t, ref_count = _reference(outputs, targets, S, S_t, count)

    # 1) near-exact path: f32 MXU matmuls, exact divide, auto batch tile.
    loss, new_s_t, new_count = online_label_smoothing_forward(
        outputs, targets, S, S_t, count, precise=True)
    jax.block_until_ready((loss, new_s_t, new_count))
    assert jnp.allclose(loss, ref_loss, atol=2e-3, rtol=2e-3), (loss, ref_loss)
    assert jnp.allclose(new_s_t, ref_s_t, atol=2e-3, rtol=2e-3)
    assert jnp.allclose(new_count, ref_count, atol=1e-3)

    # 2) fast path: bf16 MXU operands + approx reciprocal, 2-way core split,
    #    multi-step batch grid (exercises the cross-step accumulators).
    loss2, s_t2, count2 = online_label_smoothing_forward(
        outputs, targets, S, S_t, count, num_splits=2, block_b=16)
    jax.block_until_ready((loss2, s_t2, count2))
    assert jnp.allclose(loss2, ref_loss, atol=2e-2, rtol=2e-2), (loss2, ref_loss)
    assert jnp.allclose(s_t2, ref_s_t, atol=2e-2, rtol=2e-2)
    assert jnp.allclose(count2, ref_count, atol=1e-3)

    print("KERNEL_OK")
</pallas_src>

<mosaic_0001>
module attributes {stable_mosaic.version = 11 : i64} {
  func.func @_ols_kernel(%arg0: i32, %arg1: i32, %arg2: memref<64x128xbf16, #tpu.memory_space<vmem>>, %arg3: memref<64x128xbf16, #tpu.memory_space<vmem>>, %arg4: memref<128x128xf32, #tpu.memory_space<vmem>>, %arg5: memref<1x1x1xf32, #tpu.memory_space<vmem>>, %arg6: memref<1x128x128xf32, #tpu.memory_space<vmem>>, %arg7: memref<1x1x128xf32, #tpu.memory_space<vmem>>, %arg8: memref<1x1xf32, #tpu.memory_space<vmem>>) attributes {dimension_semantics = [#tpu.dimension_semantics<parallel>, #tpu.dimension_semantics<arbitrary>], iteration_bounds = array<i64: 1, 1>, scalar_prefetch = 0 : i64, scratch_operands = 1 : i64, tpu.core_type = #tpu.core_type<tc>, window_params = [{transform_indices = @transform_0, window_bounds = array<i64: 64, 128>}, {transform_indices = @transform_1, window_bounds = array<i64: 64, 128>}, {pipeline_mode = #tpu.pipeline_mode<synchronous>, transform_indices = @transform_2, window_bounds = array<i64: 128, 128>}, {pipeline_mode = #tpu.pipeline_mode<synchronous>, transform_indices = @transform_3, window_bounds = array<i64: 1, 1, 1>}, {pipeline_mode = #tpu.pipeline_mode<synchronous>, transform_indices = @transform_4, window_bounds = array<i64: 1, 128, 128>}, {pipeline_mode = #tpu.pipeline_mode<synchronous>, transform_indices = @transform_5, window_bounds = array<i64: 1, 1, 128>}]} {
    %c0 = arith.constant 0 : index
    %c0_0 = arith.constant 0 : index
    %0 = vector.load %arg2[%c0, %c0_0] : memref<64x128xbf16, #tpu.memory_space<vmem>>, vector<64x128xbf16>
    %1 = arith.extf %0 : vector<64x128xbf16> to vector<64x128xf32>
    %c0_1 = arith.constant 0 : index
    %c0_2 = arith.constant 0 : index
    %2 = vector.load %arg3[%c0_1, %c0_2] : memref<64x128xbf16, #tpu.memory_space<vmem>>, vector<64x128xbf16>
    %3 = arith.extf %2 : vector<64x128xbf16> to vector<64x128xf32>
    %cst = arith.constant dense<0xFF800000> : vector<64xf32>
    %4 = vector.multi_reduction <maximumf>, %1, %cst [1] : vector<64x128xf32> to vector<64xf32>
    %5 = vector.shape_cast %4 : vector<64xf32> to vector<64x1xf32>
    %6 = vector.broadcast %5 : vector<64x1xf32> to vector<64x128xf32>
    %7 = arith.subf %1, %6 : vector<64x128xf32>
    %8 = math.exp %7 : vector<64x128xf32>
    %cst_3 = arith.constant dense<0.000000e+00> : vector<64xf32>
    %9 = vector.multi_reduction <add>, %8, %cst_3 [1] : vector<64x128xf32> to vector<64xf32>
    %10 = vector.shape_cast %9 : vector<64xf32> to vector<64x1xf32>
    %11 = math.log %10 : vector<64x1xf32>
    %12 = vector.broadcast %11 : vector<64x1xf32> to vector<64x128xf32>
    %13 = arith.subf %7, %12 : vector<64x128xf32>
    %14 = vector.broadcast %10 : vector<64x1xf32> to vector<64x128xf32>
    %15 = arith.divf %8, %14 : vector<64x128xf32>
    %16 = tpu.iota {dimensions = array<i32: 1>} : vector<64x128xi32>
    %cst_4 = arith.constant dense<0xFF800000> : vector<64xf32>
    %17 = vector.multi_reduction <maximumf>, %3, %cst_4 [1] : vector<64x128xf32> to vector<64xf32>
    %18 = vector.shape_cast %17 : vector<64xf32> to vector<64x1xf32>
    %19 = vector.broadcast %18 : vector<64x1xf32> to vector<64x128xf32>
    %20 = arith.cmpf oeq, %3, %19 : vector<64x128xf32>
    %c128_i32 = arith.constant 128 : i32
    %21 = vector.broadcast %c128_i32 : i32 to vector<64x128xi32>
    %22 = arith.select %20, %16, %21 : vector<64x128xi1>, vector<64x128xi32>
    %cst_5 = arith.constant dense<2147483647> : vector<64xi32>
    %23 = vector.multi_reduction <minsi>, %22, %cst_5 [1] : vector<64x128xi32> to vector<64xi32>
    %24 = vector.shape_cast %23 : vector<64xi32> to vector<64x1xi32>
    %25 = vector.broadcast %5 : vector<64x1xf32> to vector<64x128xf32>
    %26 = arith.cmpf oeq, %1, %25 : vector<64x128xf32>
    %c128_i32_6 = arith.constant 128 : i32
    %27 = vector.broadcast %c128_i32_6 : i32 to vector<64x128xi32>
    %28 = arith.select %26, %16, %27 : vector<64x128xi1>, vector<64x128xi32>
    %cst_7 = arith.constant dense<2147483647> : vector<64xi32>
    %29 = vector.multi_reduction <minsi>, %28, %cst_7 [1] : vector<64x128xi32> to vector<64xi32>
    %30 = vector.shape_cast %29 : vector<64xi32> to vector<64x1xi32>
    %31 = tpu.transpose %24, [1, 0] : vector<64x1xi32> -> vector<1x64xi32>
    %32 = tpu.iota {dimensions = array<i32: 0>} : vector<128x64xi32>
    %33 = vector.broadcast %31 : vector<1x64xi32> to vector<128x64xi32>
    %34 = arith.cmpi eq, %32, %33 : vector<128x64xi32>
    %35 = arith.extui %34 : vector<128x64xi1> to vector<128x64xi32>
    %36 = arith.sitofp %35 : vector<128x64xi32> to vector<128x64xf32>
    %cst_8 = arith.constant dense<0.000000e+00> : vector<128x128xf32>
    %37 = tpu.matmul %36, %13, %cst_8 {dimension_numbers = #tpu.dot_dimension_numbers<[1], [0], [0], [1], [0, 0, 1, 1], [], []>} : vector<128x64xf32>, vector<64x128xf32>, vector<128x128xf32> -> vector<128x128xf32>
    %38 = arith.mulf %13, %3 : vector<64x128xf32>
    %39 = vector.shape_cast %38 : vector<64x128xf32> to vector<1x64x128xf32>
    %cst_9 = arith.constant dense<0.000000e+00> : vector<1xf32>
    %40 = vector.multi_reduction <add>, %39, %cst_9 [1, 2] : vector<1x64x128xf32> to vector<1xf32>
    %41 = vector.shape_cast %40 : vector<1xf32> to vector<1x1x1xf32>
    %42 = vector.extract %41[0, 0, 0] : f32 from vector<1x1x1xf32>
    %43 = vector.broadcast %42 : f32 to vector<1x1xf32>
    %c0_10 = arith.constant 0 : index
    %c0_11 = arith.constant 0 : index
    %44 = vector.load %arg4[%c0_10, %c0_11] : memref<128x128xf32, #tpu.memory_space<vmem>>, vector<128x128xf32>
    %45 = arith.mulf %37, %44 : vector<128x128xf32>
    %46 = vector.shape_cast %45 : vector<128x128xf32> to vector<1x128x128xf32>
    %cst_12 = arith.constant dense<0.000000e+00> : vector<1xf32>
    %47 = vector.multi_reduction <add>, %46, %cst_12 [1, 2] : vector<1x128x128xf32> to vector<1xf32>
    %48 = vector.shape_cast %47 : vector<1xf32> to vector<1x1x1xf32>
    %49 = vector.extract %48[0, 0, 0] : f32 from vector<1x1x1xf32>
    %50 = vector.broadcast %49 : f32 to vector<1x1xf32>
    %cst_13 = arith.constant 6.000000e-01 : f32
    %51 = vector.broadcast %cst_13 : f32 to vector<1x1xf32>
    %52 = arith.mulf %51, %43 : vector<1x1xf32>
    %cst_14 = arith.constant 4.000000e-01 : f32
    %53 = vector.broadcast %cst_14 : f32 to vector<1x1xf32>
    %54 = arith.mulf %53, %50 : vector<1x1xf32>
    %55 = arith.addf %52, %54 : vector<1x1xf32>
    %cst_15 = arith.constant 0.000000e+00 : f32
    %56 = vector.broadcast %cst_15 : f32 to vector<1x1xf32>
    %57 = arith.subf %56, %55 : vector<1x1xf32>
    %cst_16 = arith.constant 1.562500e-02 : f32
    %58 = vector.broadcast %cst_16 : f32 to vector<1x1xf32>
    %59 = arith.mulf %57, %58 : vector<1x1xf32>
    %60 = arith.cmpi eq, %30, %24 : vector<64x1xi32>
    %61 = arith.extui %60 : vector<64x1xi1> to vector<64x1xi32>
    %62 = arith.sitofp %61 : vector<64x1xi32> to vector<64x1xf32>
    %63 = vector.broadcast %62 : vector<64x1xf32> to vector<64x128xf32>
    %64 = arith.mulf %15, %63 : vector<64x128xf32>
    %cst_17 = arith.constant dense<0.000000e+00> : vector<128x128xf32>
    %65 = tpu.matmul %36, %64, %cst_17 {dimension_numbers = #tpu.dot_dimension_numbers<[1], [0], [0], [1], [0, 0, 1, 1], [], []>} : vector<128x64xf32>, vector<64x128xf32>, vector<128x128xf32> -> vector<128x128xf32>
    %66 = vector.broadcast %24 : vector<64x1xi32> to vector<64x128xi32>
    %67 = arith.cmpi eq, %16, %66 : vector<64x128xi32>
    %68 = arith.extui %67 : vector<64x128xi1> to vector<64x128xi32>
    %69 = arith.sitofp %68 : vector<64x128xi32> to vector<64x128xf32>
    %70 = vector.broadcast %62 : vector<64x1xf32> to vector<64x128xf32>
    %71 = arith.mulf %69, %70 : vector<64x128xf32>
    %cst_18 = arith.constant dense<0.000000e+00> : vector<128xf32>
    %72 = vector.multi_reduction <add>, %71, %cst_18 [0] : vector<64x128xf32> to vector<128xf32>
    %73 = vector.shape_cast %72 : vector<128xf32> to vector<1x128xf32>
    %c0_i32 = arith.constant 0 : i32
    %74 = arith.cmpi eq, %arg1, %c0_i32 : i32
    %75 = arith.extui %74 : i1 to i32
    %c0_i32_19 = arith.constant 0 : i32
    %76 = arith.cmpi ne, %75, %c0_i32_19 : i32
    scf.if %76 {
      %cst_38 = arith.constant 0.000000e+00 : f32
      %95 = vector.broadcast %cst_38 : f32 to vector<1x1xf32>
      %c0_39 = arith.constant 0 : index
      %c0_40 = arith.constant 0 : index
      %96 = vector.load %arg8[%c0_39, %c0_40] : memref<1x1xf32, #tpu.memory_space<vmem>>, vector<1x1xf32>
      tpu.vector_store %arg8[%c0_39, %c0_40], %95 {strides = array<i32>} : memref<1x1xf32, #tpu.memory_space<vmem>>, vector<1x1xf32>,
      %cst_41 = arith.constant 0.000000e+00 : f32
      %97 = vector.broadcast %cst_41 : f32 to vector<128x128xf32>
      %c0_42 = arith.constant 0 : index
      %c0_43 = arith.constant 0 : index
      %c0_44 = arith.constant 0 : index
      %98 = vector.load %arg6[%c0_42, %c0_43, %c0_44] : memref<1x128x128xf32, #tpu.memory_space<vmem>>, vector<1x128x128xf32>
      %99 = vector.shape_cast %98 : vector<1x128x128xf32> to vector<128x128xf32>
      %100 = vector.shape_cast %97 : vector<128x128xf32> to vector<1x128x128xf32>
      tpu.vector_store %arg6[%c0_42, %c0_43, %c0_44], %100 {strides = array<i32>} : memref<1x128x128xf32, #tpu.memory_space<vmem>>, vector<1x128x128xf32>,
      %cst_45 = arith.constant 0.000000e+00 : f32
      %101 = vector.broadcast %cst_45 : f32 to vector<1x128xf32>
      %c0_46 = arith.constant 0 : index
      %c0_47 = arith.constant 0 : index
      %c0_48 = arith.constant 0 : index
      %102 = vector.load %arg7[%c0_46, %c0_47, %c0_48] : memref<1x1x128xf32, #tpu.memory_space<vmem>>, vector<1x1x128xf32>
      %103 = vector.shape_cast %102 : vector<1x1x128xf32> to vector<1x128xf32>
      %104 = vector.shape_cast %101 : vector<1x128xf32> to vector<1x1x128xf32>
      tpu.vector_store %arg7[%c0_46, %c0_47, %c0_48], %104 {strides = array<i32>} : memref<1x1x128xf32, #tpu.memory_space<vmem>>, vector<1x1x128xf32>,
    } else {
    }
    %c0_20 = arith.constant 0 : index
    %c0_21 = arith.constant 0 : index
    %77 = vector.load %arg8[%c0_20, %c0_21] : memref<1x1xf32, #tpu.memory_space<vmem>>, vector<1x1xf32>
    %78 = arith.addf %77, %59 : vector<1x1xf32>
    %c0_22 = arith.constant 0 : index
    %c0_23 = arith.constant 0 : index
    %79 = vector.load %arg8[%c0_22, %c0_23] : memref<1x1xf32, #tpu.memory_space<vmem>>, vector<1x1xf32>
    tpu.vector_store %arg8[%c0_22, %c0_23], %78 {strides = array<i32>} : memref<1x1xf32, #tpu.memory_space<vmem>>, vector<1x1xf32>,
    %c0_24 = arith.constant 0 : index
    %c0_25 = arith.constant 0 : index
    %c0_26 = arith.constant 0 : index
    %80 = vector.load %arg6[%c0_24, %c0_25, %c0_26] : memref<1x128x128xf32, #tpu.memory_space<vmem>>, vector<1x128x128xf32>
    %81 = vector.shape_cast %80 : vector<1x128x128xf32> to vector<128x128xf32>
    %82 = arith.addf %81, %65 : vector<128x128xf32>
    %c0_27 = arith.constant 0 : index
    %c0_28 = arith.constant 0 : index
    %c0_29 = arith.constant 0 : index
    %83 = vector.load %arg6[%c0_27, %c0_28, %c0_29] : memref<1x128x128xf32, #tpu.memory_space<vmem>>, vector<1x128x128xf32>
    %84 = vector.shape_cast %83 : vector<1x128x128xf32> to vector<128x128xf32>
    %85 = vector.shape_cast %82 : vector<128x128xf32> to vector<1x128x128xf32>
    tpu.vector_store %arg6[%c0_27, %c0_28, %c0_29], %85 {strides = array<i32>} : memref<1x128x128xf32, #tpu.memory_space<vmem>>, vector<1x128x128xf32>,
    %c0_30 = arith.constant 0 : index
    %c0_31 = arith.constant 0 : index
    %c0_32 = arith.constant 0 : index
    %86 = vector.load %arg7[%c0_30, %c0_31, %c0_32] : memref<1x1x128xf32, #tpu.memory_space<vmem>>, vector<1x1x128xf32>
    %87 = vector.shape_cast %86 : vector<1x1x128xf32> to vector<1x128xf32>
    %88 = arith.addf %87, %73 : vector<1x128xf32>
    %c0_33 = arith.constant 0 : index
    %c0_34 = arith.constant 0 : index
    %c0_35 = arith.constant 0 : index
    %89 = vector.load %arg7[%c0_33, %c0_34, %c0_35] : memref<1x1x128xf32, #tpu.memory_space<vmem>>, vector<1x1x128xf32>
    %90 = vector.shape_cast %89 : vector<1x1x128xf32> to vector<1x128xf32>
    %91 = vector.shape_cast %88 : vector<1x128xf32> to vector<1x1x128xf32>
    tpu.vector_store %arg7[%c0_33, %c0_34, %c0_35], %91 {strides = array<i32>} : memref<1x1x128xf32, #tpu.memory_space<vmem>>, vector<1x1x128xf32>,
    %c0_i32_36 = arith.constant 0 : i32
    %92 = arith.cmpi eq, %arg1, %c0_i32_36 : i32
    %93 = arith.extui %92 : i1 to i32
    %c0_i32_37 = arith.constant 0 : i32
    %94 = arith.cmpi ne, %93, %c0_i32_37 : i32
    scf.if %94 {
      %c0_38 = arith.constant 0 : index
      %c0_39 = arith.constant 0 : index
      %95 = vector.load %arg8[%c0_38, %c0_39] : memref<1x1xf32, #tpu.memory_space<vmem>>, vector<1x1xf32>
      %c0_40 = arith.constant 0 : index
      %c0_41 = arith.constant 0 : index
      %c0_42 = arith.constant 0 : index
      %96 = vector.load %arg5[%c0_40, %c0_41, %c0_42] : memref<1x1x1xf32, #tpu.memory_space<vmem>>, vector<1x1x1xf32>
      %97 = vector.shape_cast %96 : vector<1x1x1xf32> to vector<1x1xf32>
      %98 = vector.shape_cast %95 : vector<1x1xf32> to vector<1x1x1xf32>
      tpu.vector_store %arg5[%c0_40, %c0_41, %c0_42], %98 {strides = array<i32>} : memref<1x1x1xf32, #tpu.memory_space<vmem>>, vector<1x1x1xf32>,
    } else {
    }
    return
  }
  func.func @transform_0(%arg0: i32, %arg1: i32) -> (i32, i32) {
    %c1_i32 = arith.constant 1 : i32
    %0 = arith.muli %arg0, %c1_i32 : i32
    %1 = arith.addi %0, %arg1 : i32
    %c0_i32 = arith.constant 0 : i32
    %c0_i32_0 = arith.constant 0 : i32
    return %1, %c0_i32 : i32, i32
  }
  func.func @transform_1(%arg0: i32, %arg1: i32) -> (i32, i32) {
    %c1_i32 = arith.constant 1 : i32
    %0 = arith.muli %arg0, %c1_i32 : i32
    %1 = arith.addi %0, %arg1 : i32
    %c0_i32 = arith.constant 0 : i32
    %c0_i32_0 = arith.constant 0 : i32
    return %1, %c0_i32 : i32, i32
  }
  func.func @transform_2(%arg0: i32, %arg1: i32) -> (i32, i32) {
    %c0_i32 = arith.constant 0 : i32
    %c0_i32_0 = arith.constant 0 : i32
    %c0_i32_1 = arith.constant 0 : i32
    return %c0_i32, %c0_i32_0 : i32, i32
  }
  func.func @transform_3(%arg0: i32, %arg1: i32) -> (i32, i32, i32) {
    %c0_i32 = arith.constant 0 : i32
    %c0_i32_0 = arith.constant 0 : i32
    %c0_i32_1 = arith.constant 0 : i32
    return %arg0, %c0_i32, %c0_i32_0 : i32, i32, i32
  }
  func.func @transform_4(%arg0: i32, %arg1: i32) -> (i32, i32, i32) {
    %c0_i32 = arith.constant 0 : i32
    %c0_i32_0 = arith.constant 0 : i32
    %c0_i32_1 = arith.constant 0 : i32
    return %arg0, %c0_i32, %c0_i32_0 : i32, i32, i32
  }
  func.func @transform_5(%arg0: i32, %arg1: i32) -> (i32, i32, i32) {
    %c0_i32 = arith.constant 0 : i32
    %c0_i32_0 = arith.constant 0 : i32
    %c0_i32_1 = arith.constant 0 : i32
    return %arg0, %c0_i32, %c0_i32_0 : i32, i32, i32
  }
}

</mosaic_0001>

<bundles_post_ra>
// kernel: online_label_smoothing_forward.1
= control target key start
LH: loop header
LB: loop body
LE: loop exit
PB: predicated region body
PF: predicated region fallthrough
CT: control target
= control target key end

     0   :  { %11 = vsyncpa [#allocation4], 0  ;;  %s2346_s0 = inlined_call_operand.hbm [shape: bf16[64,128], index: 0, kind: input, shape index: {}]   ;;  %s2347_s1 = inlined_call_operand.hbm [shape: bf16[64,128], index: 1, kind: input, shape index: {}]   ;;  %s2348_s2 = inlined_call_operand.hbm [shape: f32[128,128], index: 2, kind: input, shape index: {}]   ;;  %s2349_s3 = inlined_call_operand.hbm [shape: f32[1,1,1], index: 3, kind: output, shape index: {0}]   ;;  %s2350_s4 = inlined_call_operand.vmem [shape: f32[1,128,128], index: 4, kind: output, shape index: {1}]   ;;  %s2351_s5 = inlined_call_operand.vmem [shape: f32[1,1,128], index: 5, kind: output, shape index: {2}]  }
   0x1   :  { %12 = vsyncpa [#allocation7], 0 }
   0x2   :  { %13 = vsyncpa [#allocation5], 0  ;;  %s1602_s18 = smov [#allocation6]   ;;  %s1603_s20 = smov [#allocation3]  }
   0x3   :  { %s39_s19 = sshll.u32 %s1602_s18, 4  ;;  %s23_s21 = sshll.u32 %s1603_s20, 4  ;;  %s40_s19 = int_to_ptr.vmem [resolvable:$true] %s39_s19  ;;  %s1641_s21 = int_to_ptr.vmem [resolvable:$true] %s23_s21 }
   0x4   :  { %s1508_s24 = scalar_lea.hbm %s2347_s1, 512 }
   0x5   :  { %p1509_p0 = scmp.ne.s32.totalorder %s2347_s1, %s1508_s24  ;;  %p1512_p1 = scmp.lt.u32.totalorder %s1508_s24, %s2347_s1 }
   0x7   :  { %p1514_p2 = pnand %p1512_p1, %p1509_p0 }
   0x9   :  { %1517 = shalt.err (!%p1514_p2)
}
   0xa   :  { %s1518_s29 = scalar_lea.vmem %s40_s19, 512  ;;  %p1523_p4 = scmp.lt.s32.totalorder %s40_s19, %s40_s19 }
   0xb   :  { %p1519_p3 = scmp.ne.s32.totalorder %s40_s19, %s1518_s29  ;;  %p1524_p5 = scmp.lt.s32.totalorder %s1518_s29, %s1518_s29 }
   0xd   :  { %p1525_p6 = por %p1524_p5, %p1523_p4 }
   0xf   :  { %p1526_p7 = pnand %p1525_p6, %p1519_p3 }
  0x11   :  { %1529 = shalt.err (!%p1526_p7)
}
  0x12   :  { %s1604_s30 = smov 64   ;;  %s1605_s6 = smov 4  }
  0x13   :  { %45 = dma.hbm_to_vmem [thread:$0]  %s2347_s1, 512, %s40_s19, [#allocation7], %s1604_s30, %s1604_s30, %s1605_s6  }
  0x14   :  { %s1530_s11 = scalar_lea.hbm %s2346_s0, 512 }
  0x15   :  { %p1531_p8 = scmp.ne.s32.totalorder %s2346_s0, %s1530_s11  ;;  %p1534_p9 = scmp.lt.u32.totalorder %s1530_s11, %s2346_s0 }
  0x17   :  { %p1536_p10 = pnand %p1534_p9, %p1531_p8 }
  0x19   :  { %1539 = shalt.err (!%p1536_p10)
}
  0x1a   :  { %s1540_s16 = scalar_lea.vmem %s1641_s21, 512  ;;  %p1545_p12 = scmp.lt.s32.totalorder %s1641_s21, %s1641_s21 }
  0x1b   :  { %p1541_p11 = scmp.ne.s32.totalorder %s1641_s21, %s1540_s16  ;;  %p1546_p13 = scmp.lt.s32.totalorder %s1540_s16, %s1540_s16 }
  0x1d   :  { %p1547_p0 = por %p1546_p13, %p1545_p12 }
  0x1f   :  { %p1548_p1 = pnand %p1547_p0, %p1541_p11 }
  0x21   :  { %1551 = shalt.err (!%p1548_p1)
}
  0x22   :  { %29 = dma.hbm_to_vmem [thread:$0]  %s2346_s0, 512, %s1641_s21, [#allocation4], %s1604_s30, %s1604_s30, %s1605_s6  }
  0x23   :  { %s1606_s18 = smov [#allocation8]   ;;  %s1552_s23 = scalar_lea.hbm %s2348_s2, 2048 }
  0x24   :  { %s51_s19 = sshll.u32 %s1606_s18, 4  ;;  %p1553_p2 = scmp.ne.s32.totalorder %s2348_s2, %s1552_s23  ;;  %s52_s19 = int_to_ptr.vmem [resolvable:$true] %s51_s19 }
  0x25   :  { %p1556_p3 = scmp.lt.u32.totalorder %s1552_s23, %s2348_s2 }
  0x27   :  { %p1558_p4 = pnand %p1556_p3, %p1553_p2 }
  0x29   :  { %1561 = shalt.err (!%p1558_p4)
}
  0x2a   :  { %s1562_s28 = scalar_lea.vmem %s52_s19, 2048  ;;  %p1567_p6 = scmp.lt.s32.totalorder %s52_s19, %s52_s19 }
  0x2b   :  { %p1563_p5 = scmp.ne.s32.totalorder %s52_s19, %s1562_s28  ;;  %p1568_p7 = scmp.lt.s32.totalorder %s1562_s28, %s1562_s28 }
  0x2d   :  { %p1569_p8 = por %p1568_p7, %p1567_p6 }
  0x2f   :  { %p1570_p9 = pnand %p1569_p8, %p1563_p5 }
  0x31   :  { %1573 = shalt.err (!%p1570_p9)
}
  0x32   :  { %s1607_s0 = smov 128   ;;  %s1608_s21 = smov 8  }
  0x33   :  { %57 = dma.hbm_to_vmem [thread:$0]  %s2348_s2, 2048, %s52_s19, [#allocation7], %s1607_s0, %s1607_s0, %s1608_s21  }
  0x34   :  { %1596 = dma.done.wait [#allocation4], 512  }
  0x35   :  { %1597 = vsyncadd [#allocation4], 4294966784 }
  0x36   :  { %1598 = dma.done.wait [#allocation7], 2560  }
  0x37   :  { %1599 = vsyncadd [#allocation7], 4294964736  ;;  %v1265_v0 = vld [vmem:[#allocation6] sm:$0xff]   ;;  %v1283_v1 = vld [vmem:[#allocation6 + $0x8] sm:$0xff]   ;;  %v2354_v15 = vlaneseq }
  0x38   :  { %v1684_v2 = vunpack.c.l.bf16 %v1265_v0  ;;  %v1686_v3 = vunpack.c.l.bf16 %v1283_v1  ;;  %v1690_v4 = vunpack.c.h.bf16 %v1265_v0  ;;  %v1692_v5 = vunpack.c.h.bf16 %v1283_v1  ;;  %v1284_v6 = vld [vmem:[#allocation6 + $0x10] sm:$0xff]   ;;  %v1285_v9 = vld [vmem:[#allocation6 + $0x18] sm:$0xff]   ;;  %v1249_v12 = vld [vmem:[#allocation3] sm:$0xff]  }
  0x39   :  { %v1696_v7 = vunpack.c.l.bf16 %v1284_v6  ;;  %v1698_v8 = vunpack.c.h.bf16 %v1284_v6  ;;  %v1702_v10 = vunpack.c.l.bf16 %v1285_v9  ;;  %v1704_v11 = vunpack.c.h.bf16 %v1285_v9  ;;  %v1280_v47 = vld [vmem:[#allocation3 + $0x8] sm:$0xff]   ;;  %v1281_v51 = vld [vmem:[#allocation3 + $0x10] sm:$0xff]   ;;  %v1282_v54 = vld [vmem:[#allocation3 + $0x18] sm:$0xff]  }
  0x3a   :  { %201 = vmax.xlane.f32.xlu0 %v1684_v2  ;;  %205 = vmax.xlane.f32.xlu1 %v1686_v3  ;;  %v1708_v13 = vunpack.c.l.bf16 %v1249_v12  ;;  %v1711_v14 = vunpack.c.h.bf16 %v1249_v12  ;;  %v1715_v16 = vand.u32 127, %v2354_v15  ;;  %v1777_v50 = vunpack.c.l.bf16 %v1280_v47 }
  0x3b   :  { %v1781_v52 = vunpack.c.h.bf16 %v1280_v47  ;;  %v1783_v53 = vunpack.c.l.bf16 %v1281_v51  ;;  %v1787_v55 = vunpack.c.h.bf16 %v1281_v51  ;;  %v1789_v56 = vunpack.c.l.bf16 %v1282_v54 }
  0x3c   :  { %v1793_v57 = vunpack.c.h.bf16 %v1282_v54 }
  0x3e   :  { %203 = vmax.xlane.f32.xlu0 %v1690_v4  ;;  %207 = vmax.xlane.f32.xlu1 %v1692_v5 }
  0x42   :  { %209 = vmax.xlane.f32.xlu0 %v1696_v7  ;;  %211 = vmax.xlane.f32.xlu1 %v1698_v8 }
  0x46   :  { %213 = vmax.xlane.f32.xlu0 %v1702_v10  ;;  %215 = vmax.xlane.f32.xlu1 %v1704_v11 }
  0x4a   :  { %103 = vmax.xlane.f32.xlu0 %v1708_v13  ;;  %105 = vmax.xlane.f32.xlu1 %v1711_v14 }
  0xc7   :  { %v202_v17 = vpop.xlane.xlu0 %201  ;;  %v206_v18 = vpop.xlane.xlu1 %205 }
  0xc8   :  { %vm217_vm0 = vcmp.eq.f32.partialorder %v1684_v2, %v202_v17  ;;  %vm219_vm1 = vcmp.eq.f32.partialorder %v1686_v3, %v206_v18 }
  0xc9   :  { %v1720_v19 = vsel %vm217_vm0, %v1715_v16, 128  ;;  %v1723_v20 = vsel %vm219_vm1, %v1715_v16, 128 }
  0xca   :  { %v234_v21 = vshra.s32 %v1720_v19, 16  ;;  %v262_v22 = vshra.s32 %v1723_v20, 16  ;;  %v233_v59 = vand.u32 65535, %v1720_v19  ;;  %v261_v61 = vand.u32 65535, %v1723_v20 }
  0xcb   :  { %v204_v23 = vpop.xlane.xlu0 %203  ;;  %v208_v24 = vpop.xlane.xlu1 %207 }
  0xcc   :  { %vm218_vm2 = vcmp.eq.f32.partialorder %v1690_v4, %v204_v23  ;;  %v236_v25 = vcvt.s32.f32 %v234_v21  ;;  %vm220_vm3 = vcmp.eq.f32.partialorder %v1692_v5, %v208_v24  ;;  %v1736_v29 = vcvt.s32.f32 %v262_v22 }
  0xcd   :  { %v1730_v26 = vsel %vm218_vm2, %v1715_v16, 128  ;;  %v1733_v27 = vsel %vm220_vm3, %v1715_v16, 128  ;;  %v235_v1 = vcvt.s32.f32 %v233_v59  ;;  %v263_v12 = vcvt.s32.f32 %v261_v61 }
  0xce   :  { %237 = vmin.xlane.f32.xlu0 %v236_v25  ;;  %v248_v28 = vshra.s32 %v1730_v26, 16  ;;  %v276_v30 = vshra.s32 %v1733_v27, 16  ;;  %v247_v62 = vand.u32 65535, %v1730_v26  ;;  %v275_v9 = vand.u32 65535, %v1733_v27 }
  0xcf   :  { %v210_v31 = vpop.xlane.xlu0 %209  ;;  %v212_v32 = vpop.xlane.xlu1 %211 }
  0xd0   :  { %vm221_vm4 = vcmp.eq.f32.partialorder %v1696_v7, %v210_v31  ;;  %v1740_v33 = vcvt.s32.f32 %v248_v28  ;;  %vm222_vm5 = vcmp.eq.f32.partialorder %v1698_v8, %v212_v32  ;;  %v1751_v36 = vcvt.s32.f32 %v276_v30 }
  0xd1   :  { %v1744_v34 = vsel %vm221_vm4, %v1715_v16, 128  ;;  %v1747_v35 = vsel %vm222_vm5, %v1715_v16, 128  ;;  %v249_v22 = vcvt.s32.f32 %v247_v62  ;;  %v277_v26 = vcvt.s32.f32 %v275_v9 }
  0xd2   :  { %251 = vmin.xlane.f32.xlu1 %v1740_v33  ;;  %265 = vmin.xlane.f32.xlu0 %v1736_v29  ;;  %v290_v37 = vshra.s32 %v1744_v34, 16  ;;  %v304_v38 = vshra.s32 %v1747_v35, 16  ;;  %v289_v17 = vand.u32 65535, %v1744_v34 }
  0xd3   :  { %v214_v39 = vpop.xlane.xlu0 %213  ;;  %v216_v40 = vpop.xlane.xlu1 %215 }
  0xd4   :  { %vm223_vm6 = vcmp.eq.f32.partialorder %v1702_v10, %v214_v39  ;;  %v1756_v41 = vcvt.s32.f32 %v290_v37  ;;  %vm224_vm7 = vcmp.eq.f32.partialorder %v1704_v11, %v216_v40  ;;  %v1767_v44 = vcvt.s32.f32 %v304_v38 }
  0xd5   :  { %v1760_v42 = vsel %vm223_vm6, %v1715_v16, 128  ;;  %v1763_v43 = vsel %vm224_vm7, %v1715_v16, 128  ;;  %v291_v32 = vcvt.s32.f32 %v289_v17  ;;  %v2352_v17 = vmov 0.0  }
  0xd6   :  { %279 = vmin.xlane.f32.xlu1 %v1751_v36  ;;  %293 = vmin.xlane.f32.xlu0 %v1756_v41  ;;  %v318_v45 = vshra.s32 %v1760_v42, 16  ;;  %v332_v46 = vshra.s32 %v1763_v43, 16  ;;  %v317_v27 = vand.u32 65535, %v1760_v42  ;;  %v331_v34 = vand.u32 65535, %v1763_v43  ;;  %1099 = vst [vmem:[%s2351_s5] sm:$0x1] %v2352_v17 }
  0xd7   :  { %v1796_v58 = vpop.xlane.xlu0 %103  ;;  %v1799_v60 = vpop.xlane.xlu1 %105 }
  0xd8   :  { %v1771_v48 = vcvt.s32.f32 %v318_v45  ;;  %v1775_v49 = vcvt.s32.f32 %v332_v46  ;;  %v1805_v63 = vsub.f32 %v1708_v13, %v1796_v58  ;;  %v1815_v19 = vsub.f32 %v1711_v14, %v1799_v60 }
  0xd9   :  { %v319_v39 = vcvt.s32.f32 %v317_v27  ;;  %v333_v43 = vcvt.s32.f32 %v331_v34  ;;  %vm345_vm0 = vcmp.eq.f32.partialorder %v1708_v13, %v1796_v58  ;;  %vm346_vm1 = vcmp.eq.f32.partialorder %v1711_v14, %v1799_v60 }
  0xda   :  { %307 = vmin.xlane.f32.xlu1 %v1767_v44  ;;  %321 = vmin.xlane.f32.xlu0 %v1771_v48  ;;  %v127_v18 = vmul.f32 1.442695, %v1805_v63  ;;  %v129_v28 = vmul.f32 1.442695, %v1815_v19  ;;  %v1910_v34 = vsel %vm346_vm1, %v1715_v16, 128 }
  0xdb   :  { %v376_v60 = vshra.s32 %v1910_v34, 16 }
  0xdc   :  { %1460 = vpow2.f32 %v127_v18 }
  0xdd   :  { %1462 = vpow2.f32 %v129_v28 }
  0xde   :  { %335 = vmin.xlane.f32.xlu1 %v1775_v49  ;;  %107 = vmax.xlane.f32.xlu0 %v1777_v50 }
  0xe2   :  { %109 = vmax.xlane.f32.xlu1 %v1781_v52  ;;  %111 = vmax.xlane.f32.xlu0 %v1783_v53 }
  0xe6   :  { %113 = vmax.xlane.f32.xlu1 %v1787_v55  ;;  %115 = vmax.xlane.f32.xlu0 %v1789_v56  ;;  %v1852_v46 = vpop.eup %1460 }
  0xe7   :  { %v1862_v61 = vpop.eup %1462 }
  0xea   :  { %117 = vmax.xlane.f32.xlu1 %v1793_v57 }
 0x15b   :  { %v1807_v0 = vpop.xlane.xlu0 %237 }
 0x15c   :  { %vm239_vm8 = vcmp.eq.f32.partialorder %v236_v25, %v1807_v0  ;;  %v303_v25 = vand.u32 65535, %v1747_v35 }
 0x15d   :  { %v240_v6 = vsel %vm239_vm8, %v235_v1, inf }
 0x15e   :  { %241 = vmin.xlane.f32.xlu0 %v240_v6  ;;  %v305_v38 = vcvt.s32.f32 %v303_v25 }
 0x15f   :  { %v1817_v20 = vpop.xlane.xlu1 %251  ;;  %v1819_v21 = vpop.xlane.xlu0 %265 }
 0x160   :  { %vm253_vm9 = vcmp.eq.f32.partialorder %v1740_v33, %v1817_v20  ;;  %vm267_vm10 = vcmp.eq.f32.partialorder %v1736_v29, %v1819_v21 }
 0x161   :  { %v254_v23 = vsel %vm253_vm9, %v249_v22, inf  ;;  %v268_v24 = vsel %vm267_vm10, %v263_v12, inf }
 0x162   :  { %255 = vmin.xlane.f32.xlu1 %v254_v23  ;;  %269 = vmin.xlane.f32.xlu0 %v268_v24 }
 0x163   :  { %v1828_v30 = vpop.xlane.xlu1 %279  ;;  %v1830_v31 = vpop.xlane.xlu0 %293 }
 0x164   :  { %vm281_vm11 = vcmp.eq.f32.partialorder %v1751_v36, %v1828_v30  ;;  %vm295_vm12 = vcmp.eq.f32.partialorder %v1756_v41, %v1830_v31 }
 0x165   :  { %v282_v29 = vsel %vm281_vm11, %v277_v26, inf  ;;  %v296_v33 = vsel %vm295_vm12, %v291_v32, inf }
 0x166   :  { %283 = vmin.xlane.f32.xlu1 %v282_v29  ;;  %297 = vmin.xlane.f32.xlu0 %v296_v33  ;;  %v1897_v29 = vsel %vm345_vm0, %v1715_v16, 128  ;;  %vm574_vm0 = vcmask 523264  }
 0x167   :  { %v1837_v35 = vpop.xlane.xlu1 %307  ;;  %v1839_v37 = vpop.xlane.xlu0 %321  ;;  %v362_v13 = vshra.s32 %v1897_v29, 16 }
 0x168   :  { %vm309_vm13 = vcmp.eq.f32.partialorder %v1767_v44, %v1837_v35  ;;  %vm323_vm14 = vcmp.eq.f32.partialorder %v1771_v48, %v1839_v37 }
 0x169   :  { %v310_v36 = vsel %vm309_vm13, %v305_v38, inf  ;;  %v324_v40 = vsel %vm323_vm14, %v319_v39, inf  ;;  %v1917_v14 = vcvt.s32.f32 %v362_v13 }
 0x16a   :  { %311 = vmin.xlane.f32.xlu1 %v310_v36  ;;  %325 = vmin.xlane.f32.xlu0 %v324_v40  ;;  %v1926_v36 = vcvt.s32.f32 %v376_v60 }
 0x16b   :  { %v1845_v41 = vpop.xlane.xlu1 %335  ;;  %v108_v42 = vpop.xlane.xlu0 %107 }
 0x16c   :  { %v1848_v45 = vsub.f32 %v1777_v50, %v108_v42  ;;  %vm337_vm15 = vcmp.eq.f32.partialorder %v1775_v49, %v1845_v41  ;;  %vm347_vm2 = vcmp.eq.f32.partialorder %v1777_v50, %v108_v42 }
 0x16d   :  { %v338_v44 = vsel %vm337_vm15, %v333_v43, inf  ;;  %v1914_v38 = vsel %vm347_vm2, %v1715_v16, 128 }
 0x16e   :  { %v131_v47 = vmul.f32 1.442695, %v1848_v45  ;;  %339 = vmin.xlane.f32.xlu1 %v338_v44  ;;  %143 = vadd.xlane.f32.xlu0 %v1852_v46  ;;  %v390_v50 = vshra.s32 %v1914_v38, 16 }
 0x16f   :  { %v110_v48 = vpop.xlane.xlu1 %109  ;;  %v112_v51 = vpop.xlane.xlu0 %111 }
 0x170   :  { %1464 = vpow2.f32 %v131_v47  ;;  %v1857_v54 = vsub.f32 %v1781_v52, %v110_v48  ;;  %v1860_v59 = vsub.f32 %v1783_v53, %v112_v51  ;;  %vm348_vm3 = vcmp.eq.f32.partialorder %v1781_v52, %v110_v48 }
 0x171   :  { %v1923_v39 = vsel %vm348_vm3, %v1715_v16, 128  ;;  %vm349_vm4 = vcmp.eq.f32.partialorder %v1783_v53, %v112_v51  ;;  %v1929_v40 = vcvt.s32.f32 %v390_v50 }
 0x172   :  { %v133_v49 = vmul.f32 1.442695, %v1857_v54  ;;  %v135_v62 = vmul.f32 1.442695, %v1860_v59  ;;  %145 = vadd.xlane.f32.xlu1 %v1862_v61  ;;  %v404_v52 = vshra.s32 %v1923_v39, 16  ;;  %v1933_v42 = vsel %vm349_vm4, %v1715_v16, 128 }
 0x173   :  { %v114_v1 = vpop.xlane.xlu1 %113  ;;  %v116_v6 = vpop.xlane.xlu0 %115  ;;  %v418_v44 = vshra.s32 %v1933_v42, 16 }
 0x174   :  { %1466 = vpow2.f32 %v133_v49  ;;  %v1868_v9 = vsub.f32 %v1787_v55, %v114_v1  ;;  %v1871_v12 = vsub.f32 %v1789_v56, %v116_v6  ;;  %vm350_vm5 = vcmp.eq.f32.partialorder %v1787_v55, %v114_v1 }
 0x175   :  { %1468 = vpow2.f32 %v135_v62  ;;  %v1937_v43 = vcvt.s32.f32 %v404_v52  ;;  %v1941_v53 = vsel %vm350_vm5, %v1715_v16, 128  ;;  %vm351_vm6 = vcmp.eq.f32.partialorder %v1789_v56, %v116_v6 }
 0x176   :  { %v137_v18 = vmul.f32 1.442695, %v1868_v9  ;;  %v139_v22 = vmul.f32 1.442695, %v1871_v12  ;;  %v1945_v47 = vcvt.s32.f32 %v418_v44  ;;  %v432_v48 = vshra.s32 %v1941_v53, 16 }
 0x177   :  { %v118_v23 = vpop.xlane.xlu1 %117  ;;  %v1949_v51 = vsel %vm351_vm6, %v1715_v16, 128  ;;  %v272_v44 = vcvt.f32.s32 %v1819_v21  ;;  %v300_v21 = vcvt.f32.s32 %v1830_v31 }
 0x178   :  { %1470 = vpow2.f32 %v137_v18  ;;  %v1880_v24 = vsub.f32 %v1793_v57, %v118_v23  ;;  %vm352_vm7 = vcmp.eq.f32.partialorder %v1793_v57, %v118_v23  ;;  %v1953_v55 = vcvt.s32.f32 %v432_v48 }
 0x179   :  { %1472 = vpow2.f32 %v139_v22  ;;  %v446_v49 = vshra.s32 %v1949_v51, 16  ;;  %v1957_v62 = vsel %vm352_vm7, %v1715_v16, 128  ;;  %v244_v57 = vcvt.f32.s32 %v1807_v0 }
 0x17a   :  { %v1882_v25 = vpop.eup %1464  ;;  %v141_v26 = vmul.f32 1.442695, %v1880_v24  ;;  %v460_v1 = vshra.s32 %v1957_v62, 16  ;;  %v258_v23 = vcvt.f32.s32 %v1817_v20  ;;  %v273_v15 = vshll.u32 %v272_v44, 16 }
 0x17b   :  { %147 = vadd.xlane.f32.xlu0 %v1882_v25  ;;  %v1960_v56 = vcvt.s32.f32 %v446_v49  ;;  %v245_v22 = vshll.u32 %v244_v57, 16  ;;  %v286_v57 = vcvt.f32.s32 %v1828_v30  ;;  %v301_v44 = vshll.u32 %v300_v21, 16 }
 0x17c   :  { %1474 = vpow2.f32 %v141_v26  ;;  %v1964_v6 = vcvt.s32.f32 %v460_v1  ;;  %v259_v52 = vshll.u32 %v258_v23, 16  ;;  %v314_v30 = vcvt.f32.s32 %v1837_v35 }
 0x17e   :  { %v1886_v27 = vpop.eup %1466  ;;  %v315_v31 = vshll.u32 %v314_v30, 16 }
 0x17f   :  { %v1888_v28 = vpop.eup %1468  ;;  %149 = vadd.xlane.f32.xlu1 %v1886_v27 }
 0x180   :  { %2366 = vst [vmem:[#allocation13_spill] sm:$0xff] %v1888_v28  ;;  %151 = vadd.xlane.f32.xlu0 %v1888_v28 }
 0x182   :  { %v1894_v32 = vpop.eup %1470 }
 0x183   :  { %2367 = vst [vmem:[#allocation14_spill] sm:$0xff] %v1894_v32  ;;  %v1899_v33 = vpop.eup %1472  ;;  %153 = vadd.xlane.f32.xlu1 %v1894_v32 }
 0x184   :  { %2368 = vst [vmem:[#allocation15_spill] sm:$0xff] %v1899_v33  ;;  %155 = vadd.xlane.f32.xlu0 %v1899_v33  ;;  %v375_v33 = vand.u32 65535, %v1910_v34 }
 0x186   :  { %v1907_v58 = vpop.eup %1474 }
 0x187   :  { %2369 = vst [vmem:[#allocation16_spill] sm:$0xff] %v1907_v58  ;;  %157 = vadd.xlane.f32.xlu1 %v1907_v58 }
 0x18b   :  { %365 = vmin.xlane.f32.xlu1 %v1917_v14 }
 0x18f   :  { %379 = vmin.xlane.f32.xlu1 %v1926_v36 }
 0x193   :  { %393 = vmin.xlane.f32.xlu1 %v1929_v40 }
 0x197   :  { %407 = vmin.xlane.f32.xlu1 %v1937_v43 }
 0x19b   :  { %421 = vmin.xlane.f32.xlu1 %v1945_v47 }
 0x19f   :  { %435 = vmin.xlane.f32.xlu1 %v1953_v55 }
 0x1a3   :  { %449 = vmin.xlane.f32.xlu1 %v1960_v56 }
 0x1a7   :  { %463 = vmin.xlane.f32.xlu1 %v1964_v6 }
 0x1eb   :  { %v242_v18 = vpop.xlane.xlu0 %241 }
 0x1ec   :  { %v243_v26 = vcvt.f32.s32 %v242_v18 }
 0x1ee   :  { %v1969_v13 = vadd.s32 %v245_v22, %v243_v26  ;;  %v287_v26 = vshll.u32 %v286_v57, 16  ;;  %v328_v57 = vcvt.f32.s32 %v1839_v37 }
 0x1ef   :  { %v256_v60 = vpop.xlane.xlu1 %255  ;;  %v270_v50 = vpop.xlane.xlu0 %269 }
 0x1f0   :  { %v257_v48 = vcvt.f32.s32 %v256_v60  ;;  %473 = vxpose.xlu0.b32.start [1/8] (short) (narrow) %v1969_v13, 8  ;;  %v271_v1 = vcvt.f32.s32 %v270_v50  ;;  %v329_v35 = vshll.u32 %v328_v57, 16 }
 0x1f2   :  { %v1973_v49 = vadd.s32 %v259_v52, %v257_v48  ;;  %v1977_v20 = vadd.s32 %v273_v15, %v271_v1 }
 0x1f3   :  { %v284_v17 = vpop.xlane.xlu1 %283  ;;  %v298_v0 = vpop.xlane.xlu0 %297 }
 0x1f4   :  { %474 = vxpose.xlu0.b32.cont [2/8] (short) (narrow) %v1973_v49, 8  ;;  %v285_v18 = vcvt.f32.s32 %v284_v17  ;;  %v299_v50 = vcvt.f32.s32 %v298_v0 }
 0x1f6   :  { %v1981_v60 = vadd.s32 %v287_v26, %v285_v18  ;;  %v1988_v15 = vadd.s32 %v301_v44, %v299_v50  ;;  %v342_v26 = vcvt.f32.s32 %v1845_v41 }
 0x1f7   :  { %v312_v22 = vpop.xlane.xlu1 %311  ;;  %v326_v23 = vpop.xlane.xlu0 %325 }
 0x1f8   :  { %475 = vxpose.xlu0.b32.cont [3/8] (short) (narrow) %v1977_v20, 8  ;;  %v313_v17 = vcvt.f32.s32 %v312_v22  ;;  %v327_v18 = vcvt.f32.s32 %v326_v23  ;;  %v343_v44 = vshll.u32 %v342_v26, 16 }
 0x1fa   :  { %v1995_v0 = vadd.s32 %v315_v31, %v313_v17  ;;  %v1999_v50 = vadd.s32 %v329_v35, %v327_v18 }
 0x1fb   :  { %v340_v52 = vpop.xlane.xlu1 %339  ;;  %v1983_v48 = vpop.xlane.xlu0 %143 }
 0x1fc   :  { %1476 = vlog2.f32 %v1983_v48  ;;  %476 = vxpose.xlu0.b32.cont [4/8] (short) (narrow) %v1981_v60, 8  ;;  %2370 = vst [vmem:[#allocation17_spill] sm:$0xff] %v1995_v0  ;;  %2371 = vst [vmem:[#allocation18_spill] sm:$0xff] %v1999_v50  ;;  %v341_v22 = vcvt.f32.s32 %v340_v52 }
 0x1fe   :  { %v2005_v31 = vadd.s32 %v343_v44, %v341_v22 }
 0x1ff   :  { %v1990_v1 = vpop.xlane.xlu1 %145 }
 0x200   :  { %1478 = vlog2.f32 %v1990_v1  ;;  %477 = vxpose.xlu0.b32.cont [5/8] (short) (narrow) %v1988_v15, 8  ;;  %2372 = vst [vmem:[#allocation19_spill] sm:$0xff] %v2005_v31 }
 0x204   :  { %478 = vxpose.xlu0.b32.cont [6/8] (short) (narrow) %v1995_v0, 8 }
 0x206   :  { %v1477_v21 = vpop.eup %1476 }
 0x207   :  { %v160_v30 = vmul.f32 0.6931472, %v1477_v21 }
 0x208   :  { %479 = vxpose.xlu0.b32.cont [7/8] (short) (narrow) %v1999_v50, 8  ;;  %v2002_v37 = vpop.xlane.xlu0 %147 }
 0x209   :  { %1480 = vlog2.f32 %v2002_v37  ;;  %v175_v52 = vsub.f32 %v1805_v63, %v160_v30  ;;  %v361_v63 = vand.u32 65535, %v1897_v29 }
 0x20a   :  { %v1479_v17 = vpop.eup %1478 }
 0x20b   :  { %v162_v23 = vmul.f32 0.6931472, %v1479_v17  ;;  %v363_v58 = vcvt.s32.f32 %v361_v63  ;;  %v389_v63 = vand.u32 65535, %v1914_v38  ;;  %v403_v38 = vand.u32 65535, %v1923_v39 }
 0x20c   :  { %v2007_v57 = vpop.xlane.xlu1 %149  ;;  %480 = vxpose.xlu0.b32.end [8/8] (short) (narrow) %v2005_v31, 8 }
 0x20d   :  { %1482 = vlog2.f32 %v2007_v57  ;;  %v2011_v41 = vpop.xlane.xlu0 %151  ;;  %v176_v18 = vsub.f32 %v1815_v19, %v162_v23 }
 0x20e   :  { %1484 = vlog2.f32 %v2011_v41 }
 0x20f   :  { %v1414_v35 = vpack.c.bf16 %v176_v18, %v175_v52 }
 0x210   :  { %v2016_v26 = vpop.xlane.xlu1 %153 }
 0x211   :  { %1486 = vlog2.f32 %v2016_v26  ;;  %v2019_v21 = vpop.xlane.xlu0 %155  ;;  %1415 = vmatprep.subr.bf16.mxu0 %v1414_v35 }
 0x212   :  { %1417 = vmatpush3.bf16.msra.mxu0 %v1414_v35  ;;  %1488 = vlog2.f32 %v2019_v21 }
 0x213   :  { %v1481_v22 = vpop.eup %1480 }
 0x214   :  { %v2022_v44 = vpop.xlane.xlu1 %157  ;;  %v164_v19 = vmul.f32 0.6931472, %v1481_v22 }
 0x215   :  { %2373 = vst [vmem:[#allocation20_spill] sm:$0xff] %v2022_v44  ;;  %1490 = vlog2.f32 %v2022_v44  ;;  %v377_v44 = vcvt.s32.f32 %v375_v33 }
 0x216   :  { %v177_v32 = vsub.f32 %v1848_v45, %v164_v19  ;;  %v391_v19 = vcvt.s32.f32 %v389_v63  ;;  %v445_v63 = vand.u32 65535, %v1949_v51  ;;  %1492 = vrcp.f32 %v1983_v48 }
 0x217   :  { %v1483_v30 = vpop.eup %1482  ;;  %1494 = vrcp.f32 %v1990_v1 }
 0x218   :  { %v166_v17 = vmul.f32 0.6931472, %v1483_v30  ;;  %v2026_v23 = vpop.xlane.xlu1 %365  ;;  %v1485_v31 = vpop.eup %1484  ;;  %1496 = vrcp.f32 %v2002_v37 }
 0x219   :  { %vm367_vm8 = vcmp.eq.f32.partialorder %v1917_v14, %v2026_v23  ;;  %v168_v35 = vmul.f32 0.6931472, %v1485_v31  ;;  %1498 = vrcp.f32 %v2007_v57 }
 0x21a   :  { %v368_v50 = vsel %vm367_vm8, %v363_v58, inf  ;;  %v178_v29 = vsub.f32 %v1857_v54, %v166_v17  ;;  %v769_v17 = vmul.f32 %v1690_v4, %v176_v18  ;;  %v417_v4 = vand.u32 65535, %v1933_v42 }
 0x21b   :  { %v1487_v0 = vpop.eup %1486  ;;  %369 = vmin.xlane.f32.xlu1 %v368_v50  ;;  %v179_v45 = vsub.f32 %v1860_v59, %v168_v35  ;;  %v770_v35 = vmul.f32 %v1686_v3, %v177_v32  ;;  %1500 = vrcp.f32 %v2011_v41 }
 0x21c   :  { %v170_v22 = vmul.f32 0.6931472, %v1487_v0  ;;  %v2033_v28 = vpop.xlane.xlu1 %379  ;;  %v1418_v30 = vpack.c.bf16 %v178_v29, %v177_v32  ;;  %v1489_v34 = vpop.eup %1488  ;;  %v419_v3 = vcvt.s32.f32 %v417_v4  ;;  %v431_v32 = vand.u32 65535, %v1941_v53 }
 0x21d   :  { %vm381_vm9 = vcmp.eq.f32.partialorder %v1926_v36, %v2033_v28  ;;  %v172_v14 = vmul.f32 0.6931472, %v1489_v34  ;;  %1502 = vrcp.f32 %v2016_v26 }
 0x21e   :  { %1419 = vmatprep.subr.bf16.mxu0 %v1418_v30  ;;  %v382_v58 = vsel %vm381_vm9, %v377_v44, inf  ;;  %v180_v54 = vsub.f32 %v1868_v9, %v170_v22  ;;  %v768_v44 = vmul.f32 %v1684_v2, %v175_v52  ;;  %1504 = vrcp.f32 %v2019_v21 }
 0x21f   :  { %v1491_v31 = vpop.eup %1490  ;;  %383 = vmin.xlane.f32.xlu1 %v382_v58  ;;  %1421 = vmatpush3.bf16.msra.mxu0 %v1418_v30  ;;  %v181_v59 = vsub.f32 %v1871_v12, %v172_v14  ;;  %v405_v30 = vcvt.s32.f32 %v403_v38 }
 0x220   :  { %v174_v0 = vmul.f32 0.6931472, %v1491_v31  ;;  %v2040_v50 = vpop.xlane.xlu1 %393  ;;  %v1422_v33 = vpack.c.bf16 %v180_v54, %v179_v45  ;;  %v776_v18 = vadd.f32 %v769_v17, %v768_v44  ;;  %v773_v34 = vmul.f32 %v1698_v8, %v180_v54 }
 0x221   :  { %vm395_vm10 = vcmp.eq.f32.partialorder %v1929_v40, %v2040_v50  ;;  %v771_v40 = vmul.f32 %v1692_v5, %v178_v29  ;;  %v772_v5 = vmul.f32 %v1696_v7, %v179_v45  ;;  %v459_v31 = vand.u32 65535, %v1957_v62 }
 0x222   :  { %1423 = vmatprep.subr.bf16.mxu0 %v1422_v33  ;;  %v396_v36 = vsel %vm395_vm10, %v391_v19, inf  ;;  %v182_v9 = vsub.f32 %v1880_v24, %v174_v0  ;;  %v777_v24 = vadd.f32 %v776_v18, %v770_v35  ;;  %v774_v51 = vmul.f32 %v1702_v10, %v181_v59 }
 0x223   :  { %397 = vmin.xlane.f32.xlu1 %v396_v36  ;;  %1425 = vmatpush3.bf16.msra.mxu0 %v1422_v33  ;;  %v2374_v19 = vlaneseq }
 0x224   :  { %v2050_v22 = vpop.xlane.xlu1 %407  ;;  %v1426_v39 = vpack.c.bf16 %v182_v9, %v181_v59  ;;  %v778_v42 = vadd.f32 %v777_v24, %v771_v40  ;;  %v775_v8 = vmul.f32 %v1704_v11, %v182_v9 }
 0x225   :  { %vm409_vm11 = vcmp.eq.f32.partialorder %v1937_v43, %v2050_v22  ;;  %v433_v43 = vcvt.s32.f32 %v431_v32 }
 0x226   :  { %1427 = vmatprep.subr.bf16.mxu0 %v1426_v39  ;;  %v410_v12 = vsel %vm409_vm11, %v405_v30, inf  ;;  %v779_v14 = vadd.f32 %v778_v42, %v772_v5 }
 0x227   :  { %411 = vmin.xlane.f32.xlu1 %v410_v12  ;;  %1429 = vmatpush3.bf16.msra.mxu0 %v1426_v39 }
 0x228   :  { %v2056_v2 = vpop.xlane.xlu1 %421  ;;  %v780_v7 = vadd.f32 %v779_v14, %v773_v34 }
 0x229   :  { %vm423_vm12 = vcmp.eq.f32.partialorder %v1945_v47, %v2056_v2  ;;  %v447_v47 = vcvt.s32.f32 %v445_v63 }
 0x22a   :  { %v424_v52 = vsel %vm423_vm12, %v419_v3, inf  ;;  %v781_v54 = vadd.f32 %v780_v7, %v774_v51 }
 0x22b   :  { %425 = vmin.xlane.f32.xlu1 %v424_v52 }
 0x22c   :  { %v2062_v29 = vpop.xlane.xlu1 %435  ;;  %v782_v62 = vadd.f32 %v781_v54, %v775_v8 }
 0x22d   :  { %vm437_vm13 = vcmp.eq.f32.partialorder %v1953_v55, %v2062_v29  ;;  %v461_v55 = vcvt.s32.f32 %v459_v31 }
 0x22e   :  { %v438_v53 = vsel %vm437_vm13, %v433_v43, inf }
 0x22f   :  { %439 = vmin.xlane.f32.xlu1 %v438_v53 }
 0x230   :  { %v2068_v58 = vpop.xlane.xlu1 %449 }
 0x231   :  { %vm451_vm14 = vcmp.eq.f32.partialorder %v1960_v56, %v2068_v58  ;;  %v506_v56 = vshrl.u32 %v2374_v19, 7  ;;  %v1493_v19 = vpop.eup %1492 }
 0x232   :  { %v452_v45 = vsel %vm451_vm14, %v447_v47, inf  ;;  %v184_v48 = vmul.f32 %v1493_v19, %v1852_v46 }
 0x233   :  { %453 = vmin.xlane.f32.xlu1 %v452_v45  ;;  %v524_v38 = vsub.s32 0, %v506_v56  ;;  %v507_v17 = vadd.s32 8, %v506_v56  ;;  %v508_v36 = vadd.s32 16, %v506_v56  ;;  %v509_v59 = vadd.s32 24, %v506_v56 }
 0x234   :  { %v2074_v0 = vpop.xlane.xlu1 %463  ;;  %v510_v11 = vadd.s32 32, %v506_v56  ;;  %v511_v30 = vadd.s32 40, %v506_v56  ;;  %v512_v4 = vadd.s32 48, %v506_v56  ;;  %v513_v12 = vadd.s32 56, %v506_v56 }
 0x235   :  { %vm465_vm15 = vcmp.eq.f32.partialorder %v1964_v6, %v2074_v0  ;;  %v2375_v6 = vmov 0.0   ;;  %v514_v24 = vadd.s32 64, %v506_v56  ;;  %v515_v42 = vadd.s32 72, %v506_v56 }
 0x236   :  { %v466_v33 = vsel %vm465_vm15, %v461_v55, inf  ;;  %v516_v52 = vadd.s32 80, %v506_v56  ;;  %v517_v63 = vadd.s32 88, %v506_v56  ;;  %v518_v34 = vadd.s32 96, %v506_v56 }
 0x237   :  { %467 = vmin.xlane.f32.xlu1 %v466_v33  ;;  %v519_v47 = vadd.s32 104, %v506_v56  ;;  %v520_v31 = vadd.s32 112, %v506_v56  ;;  %v521_v51 = vadd.s32 120, %v506_v56  ;;  %v372_v33 = vcvt.f32.s32 %v2026_v23 }
 0x238   :  { %v400_v23 = vcvt.f32.s32 %v2040_v50 }
 0x23a   :  { %v401_v50 = vshll.u32 %v400_v23, 16 }
 0x23b   :  { %783 = vadd.xlane.f32.xlu1 %v782_v62 }
 0x270   :  { %v489_v44 = vpop.trf.xlu0 }
 0x271   :  { %v2080_v10 = vrot.slane %v489_v44, %v524_v38  ;;  %v386_v38 = vcvt.f32.s32 %v2033_v28 }
 0x273   :  { %vm526_vm1 = vcmp.eq.s32.totalorder %v506_v56, %v2080_v10  ;;  %vm527_vm2 = vcmp.eq.s32.totalorder %v507_v17, %v2080_v10  ;;  %vm528_vm3 = vcmp.eq.s32.totalorder %v508_v36, %v2080_v10  ;;  %vm529_vm4 = vcmp.eq.s32.totalorder %v509_v59, %v2080_v10 }
 0x274   :  { %v1184_v9 = vsel %vm526_vm1, 1.0, %v2375_v6  ;;  %v2087_v35 = vsel %vm527_vm2, 1.0, %v2375_v6  ;;  %v2094_v39 = vsel %vm528_vm3, 1.0, %v2375_v6  ;;  %vm530_vm5 = vcmp.eq.s32.totalorder %v510_v11, %v2080_v10 }
 0x275   :  { %1350 = vmatprep.mubr.msk.f32.mxu0 %vm574_vm0, %v1184_v9  ;;  %1390 = vmatprep.mubr.msk.f32.mxu1 %vm574_vm0, %v1184_v9  ;;  %v2101_v18 = vsel %vm529_vm4, 1.0, %v2375_v6  ;;  %v2106_v40 = vsel %vm530_vm5, 1.0, %v2375_v6  ;;  %vm531_vm6 = vcmp.eq.s32.totalorder %v511_v30, %v2080_v10  ;;  %vm532_vm7 = vcmp.eq.s32.totalorder %v512_v4, %v2080_v10 }
 0x276   :  { %1351 = vmatmul.mubr.msk.f32.vlgmr.msra.gmra.mrb[0].mxu0 %vm574_vm0, %v2087_v35  ;;  %v2113_v3 = vsel %vm531_vm6, 1.0, %v2375_v6  ;;  %v2118_v32 = vsel %vm532_vm7, 1.0, %v2375_v6  ;;  %vm533_vm8 = vcmp.eq.s32.totalorder %v513_v12, %v2080_v10  ;;  %vm534_vm9 = vcmp.eq.s32.totalorder %v514_v24, %v2080_v10 }
 0x277   :  { %1353 = vmatprep.mubr.msk.f32.mxu0 %vm574_vm0, %v2094_v39  ;;  %v2125_v5 = vsel %vm533_vm8, 1.0, %v2375_v6  ;;  %v2130_v43 = vsel %vm534_vm9, 1.0, %v2375_v6  ;;  %vm535_vm10 = vcmp.eq.s32.totalorder %v515_v42, %v2080_v10  ;;  %vm536_vm11 = vcmp.eq.s32.totalorder %v516_v52, %v2080_v10 }
 0x278   :  { %v2137_v14 = vsel %vm535_vm10, 1.0, %v2375_v6  ;;  %v2142_v53 = vsel %vm536_vm11, 1.0, %v2375_v6  ;;  %vm537_vm12 = vcmp.eq.s32.totalorder %v517_v63, %v2080_v10  ;;  %vm538_vm13 = vcmp.eq.s32.totalorder %v518_v34, %v2080_v10 }
 0x279   :  { %v2149_v7 = vsel %vm537_vm12, 1.0, %v2375_v6  ;;  %v2154_v45 = vsel %vm538_vm13, 1.0, %v2375_v6  ;;  %vm539_vm14 = vcmp.eq.s32.totalorder %v519_v47, %v2080_v10  ;;  %vm540_vm15 = vcmp.eq.s32.totalorder %v520_v31, %v2080_v10 }
 0x27a   :  { %1354 = vmatmul.mubr.msk.f32.gmra.mrb[2].mxu0 %vm574_vm0, %v2101_v18  ;;  %v2161_v55 = vsel %vm539_vm14, 1.0, %v2375_v6  ;;  %v2166_v8 = vsel %vm540_vm15, 1.0, %v2375_v6  ;;  %vm541_vm1 = vcmp.eq.s32.totalorder %v521_v51, %v2080_v10  ;;  %v373_v56 = vshll.u32 %v372_v33, 16  ;;  %v1495_v10 = vpop.eup %1494 }
 0x27b   :  { %1356 = vmatprep.mubr.msk.f32.mxu0 %vm574_vm0, %v2106_v40  ;;  %v2172_v54 = vsel %vm541_vm1, 1.0, %v2375_v6  ;;  %vm1032_vm2 = vcmp.eq.s32.totalorder %v1715_v16, %v1969_v13  ;;  %v387_v1 = vshll.u32 %v386_v38, 16  ;;  %vm1033_vm4 = vcmp.eq.s32.totalorder %v1715_v16, %v1973_v49  ;;  %v1497_v30 = vpop.eup %1496 }
 0x27c   :  { %v414_v11 = vcvt.f32.s32 %v2050_v22  ;;  %v1240_v46 = vsel %vm1032_vm2, 1.0, %v2375_v6  ;;  %v186_v4 = vmul.f32 %v1495_v10, %v1862_v61  ;;  %vm1034_vm6 = vcmp.eq.s32.totalorder %v1715_v16, %v1977_v20  ;;  %v1499_v61 = vpop.eup %1498 }
 0x27d   :  { %v1241_v12 = vsel %vm1033_vm4, 1.0, %v2375_v6  ;;  %v428_v34 = vcvt.f32.s32 %v2056_v2  ;;  %v188_v47 = vmul.f32 %v1497_v30, %v1882_v25  ;;  %vm1035_vm8 = vcmp.eq.s32.totalorder %v1715_v16, %v1981_v60 }
 0x27e   :  { %1357 = vmatmul.mubr.msk.f32.gmra.mrb[4].mxu0 %vm574_vm0, %v2113_v3  ;;  %v415_v63 = vshll.u32 %v414_v11, 16  ;;  %vm1036_vm10 = vcmp.eq.s32.totalorder %v1715_v16, %v1988_v15  ;;  %v2377_v11 = vld [vmem:[#allocation13_spill] sm:$0xff] }
 0x27f   :  { %1359 = vmatprep.mubr.msk.f32.mxu0 %vm574_vm0, %v2118_v32  ;;  %v1244_v21 = vsel %vm1036_vm10, 1.0, %v2375_v6 }
 0x282   :  { %1360 = vmatmul.mubr.msk.f32.gmra.mrb[6].mxu0 %vm574_vm0, %v2125_v5 }
 0x283   :  { %1362 = vmatprep.mubr.msk.f32.mxu0 %vm574_vm0, %v2130_v43 }
 0x286   :  { %1363 = vmatmul.mubr.msk.f32.gmra.mrb[8].mxu0 %vm574_vm0, %v2137_v14 }
 0x287   :  { %1365 = vmatprep.mubr.msk.f32.mxu0 %vm574_vm0, %v2142_v53 }
 0x28a   :  { %1366 = vmatmul.mubr.msk.f32.gmra.mrb[10].mxu0 %vm574_vm0, %v2149_v7 }
 0x28b   :  { %1368 = vmatprep.mubr.msk.f32.mxu0 %vm574_vm0, %v2154_v45 }
 0x28e   :  { %1369 = vmatmul.mubr.msk.f32.gmra.mrb[12].mxu0 %vm574_vm0, %v2161_v55 }
 0x28f   :  { %1371 = vmatprep.mubr.msk.f32.mxu0 %vm574_vm0, %v2166_v8 }
 0x292   :  { %1372 = vmatmul.mubr.msk.f32.gmra.mrb[14].mxu0 %vm574_vm0, %v2172_v54 }
 0x2a8   :  { %v370_v62 = vpop.xlane.xlu1 %369 }
 0x2a9   :  { %v371_v17 = vcvt.f32.s32 %v370_v62  ;;  %v1242_v62 = vsel %vm1034_vm6, 1.0, %v2375_v6 }
 0x2ab   :  { %v374_v36 = vadd.s32 %v373_v56, %v371_v17  ;;  %v442_v56 = vcvt.f32.s32 %v2062_v29  ;;  %v190_v17 = vmul.f32 %v1499_v61, %v1886_v27  ;;  %v2376_v27 = vld [vmem:[#allocation20_spill] sm:$0xff]  ;;  %v2380_v61 = vld [vmem:[#allocation18_spill] sm:$0xff] }
 0x2ac   :  { %v384_v44 = vpop.xlane.xlu1 %383  ;;  %1506 = vrcp.f32 %v2376_v27  ;;  %vm1038_vm14 = vcmp.eq.s32.totalorder %v1715_v16, %v2380_v61 }
 0x2ad   :  { %vm855_vm3 = vcmp.eq.s32.totalorder %v374_v36, %v1969_v13  ;;  %v385_v37 = vcvt.f32.s32 %v384_v44  ;;  %v1501_v36 = vpop.eup %1500  ;;  %v429_v44 = vshll.u32 %v428_v34, 16 }
 0x2ae   :  { %v1216_v59 = vsel %vm855_vm3, 1.0, %v2375_v6 }
 0x2af   :  { %v388_v28 = vadd.s32 %v387_v1, %v385_v37  ;;  %v879_v57 = vmul.f32 %v1216_v59, %v184_v48  ;;  %v1056_v42 = vmul.f32 %v1240_v46, %v1216_v59  ;;  %v1243_v1 = vsel %vm1035_vm8, 1.0, %v2375_v6  ;;  %v1503_v59 = vpop.eup %1502 }
 0x2b0   :  { %v398_v9 = vpop.xlane.xlu1 %397 }
 0x2b1   :  { %vm856_vm5 = vcmp.eq.s32.totalorder %v388_v28, %v1973_v49  ;;  %v399_v13 = vcvt.f32.s32 %v398_v9  ;;  %v443_v28 = vshll.u32 %v442_v56, 16  ;;  %v192_v9 = vmul.f32 %v1501_v36, %v2377_v11  ;;  %v2381_v36 = vld [vmem:[#allocation19_spill] sm:$0xff] }
 0x2b2   :  { %v1217_v41 = vsel %vm856_vm5, 1.0, %v2375_v6  ;;  %vm1039_vm1 = vcmp.eq.s32.totalorder %v1715_v16, %v2381_v36 }
 0x2b3   :  { %v402_v22 = vadd.s32 %v401_v50, %v399_v13  ;;  %v880_v24 = vmul.f32 %v1217_v41, %v186_v4  ;;  %v1057_v52 = vmul.f32 %v1241_v12, %v1217_v41  ;;  %v2378_v4 = vld [vmem:[#allocation17_spill] sm:$0xff]  ;;  %v1247_v27 = vsel %vm1039_vm1, 1.0, %v2375_v6 }
 0x2b4   :  { %v412_v49 = vpop.xlane.xlu1 %411  ;;  %vm1037_vm12 = vcmp.eq.s32.totalorder %v1715_v16, %v2378_v4 }
 0x2b5   :  { %vm857_vm7 = vcmp.eq.s32.totalorder %v402_v22, %v1977_v20  ;;  %v413_v31 = vcvt.f32.s32 %v412_v49  ;;  %v1430_v51 = vpack.c.bf16 %v880_v24, %v879_v57  ;;  %v1064_v26 = vadd.f32 %v1057_v52, %v1056_v42  ;;  %v2379_v42 = vld [vmem:[#allocation14_spill] sm:$0xff] }
 0x2b6   :  { %v1218_v33 = vsel %vm857_vm7, 1.0, %v2375_v6  ;;  %v470_v22 = vcvt.f32.s32 %v2074_v0  ;;  %v194_v52 = vmul.f32 %v1503_v59, %v2379_v42 }
 0x2b7   :  { %v1058_v2 = vmul.f32 %v1242_v62, %v1218_v33  ;;  %v416_v19 = vadd.s32 %v415_v63, %v413_v31  ;;  %1431 = vmatprep.subr.bf16.mxu1 %v1430_v51  ;;  %v881_v25 = vmul.f32 %v1218_v33, %v188_v47  ;;  %v1505_v62 = vpop.eup %1504 }
 0x2b8   :  { %v426_v38 = vpop.xlane.xlu1 %425  ;;  %1433 = vmatpush3.bf16.msra.mxu1 %v1430_v51  ;;  %v471_v0 = vshll.u32 %v470_v22, 16  ;;  %v1507_v56 = vpop.eup %1506 }
 0x2b9   :  { %vm858_vm9 = vcmp.eq.s32.totalorder %v416_v19, %v1981_v60  ;;  %v1065_v48 = vadd.f32 %v1064_v26, %v1058_v2  ;;  %v427_v20 = vcvt.f32.s32 %v426_v38  ;;  %v456_v60 = vcvt.f32.s32 %v2068_v58 }
 0x2ba   :  { %v1219_v23 = vsel %vm858_vm9, 1.0, %v2375_v6 }
 0x2bb   :  { %v1059_v29 = vmul.f32 %v1243_v1, %v1219_v23  ;;  %v430_v37 = vadd.s32 %v429_v44, %v427_v20  ;;  %v882_v10 = vmul.f32 %v1219_v23, %v190_v17  ;;  %v457_v63 = vshll.u32 %v456_v60, 16  ;;  %v2382_v1 = vld [vmem:[#allocation15_spill] sm:$0xff] }
 0x2bc   :  { %v440_v57 = vpop.xlane.xlu1 %439  ;;  %v1246_v17 = vsel %vm1038_vm14, 1.0, %v2375_v6  ;;  %v196_v23 = vmul.f32 %v1505_v62, %v2382_v1 }
 0x2bd   :  { %vm859_vm11 = vcmp.eq.s32.totalorder %v430_v37, %v1988_v15  ;;  %v1066_v46 = vadd.f32 %v1065_v48, %v1059_v29  ;;  %v441_v30 = vcvt.f32.s32 %v440_v57  ;;  %v1434_v50 = vpack.c.bf16 %v882_v10, %v881_v25  ;;  %v2383_v10 = vld [vmem:[#allocation16_spill] sm:$0xff] }
 0x2be   :  { %v1220_v13 = vsel %vm859_vm11, 1.0, %v2375_v6  ;;  %v1245_v15 = vsel %vm1037_vm12, 1.0, %v2375_v6  ;;  %v198_v59 = vmul.f32 %v1507_v56, %v2383_v10 }
 0x2bf   :  { %v1060_v41 = vmul.f32 %v1244_v21, %v1220_v13  ;;  %v444_v58 = vadd.s32 %v443_v28, %v441_v30  ;;  %1435 = vmatprep.subr.bf16.mxu1 %v1434_v50  ;;  %v883_v12 = vmul.f32 %v1220_v13, %v192_v9 }
 0x2c0   :  { %v454_v24 = vpop.xlane.xlu1 %453  ;;  %1437 = vmatpush3.bf16.msra.mxu1 %v1434_v50 }
 0x2c1   :  { %v1067_v34 = vadd.f32 %v1066_v46, %v1060_v41  ;;  %vm860_vm13 = vcmp.eq.s32.totalorder %v444_v58, %v2378_v4  ;;  %v455_v49 = vcvt.f32.s32 %v454_v24  ;;  %v1152_v24 = vld [vmem:[%s2351_s5] sm:$0x1] }
 0x2c2   :  { %v1221_v47 = vsel %vm860_vm13, 1.0, %v2375_v6 }
 0x2c3   :  { %v1061_v31 = vmul.f32 %v1245_v15, %v1221_v47  ;;  %v458_v51 = vadd.s32 %v457_v63, %v455_v49  ;;  %v884_v26 = vmul.f32 %v1221_v47, %v194_v52  ;;  %v797_v63 = vld [vmem:[#allocation8 + $0x20] sm:$0xff] }
 0x2c4   :  { %v468_v33 = vpop.xlane.xlu1 %467 }
 0x2c5   :  { %v1068_v2 = vadd.f32 %v1067_v34, %v1061_v31  ;;  %vm861_vm15 = vcmp.eq.s32.totalorder %v458_v51, %v2380_v61  ;;  %v469_v19 = vcvt.f32.s32 %v468_v33  ;;  %v1438_v25 = vpack.c.bf16 %v884_v26, %v883_v12  ;;  %v799_v61 = vld [vmem:[#allocation8 + $0x30] sm:$0xff] }
 0x2c6   :  { %v1222_v38 = vsel %vm861_vm15, 1.0, %v2375_v6 }
 0x2c7   :  { %v1062_v44 = vmul.f32 %v1246_v17, %v1222_v38  ;;  %v472_v48 = vadd.s32 %v471_v0, %v469_v19  ;;  %1439 = vmatprep.subr.bf16.mxu1 %v1438_v25  ;;  %v885_v16 = vmul.f32 %v1222_v38, %v196_v23  ;;  %v800_v0 = vld [vmem:[#allocation8 + $0x38] sm:$0xff]  ;;  %v801_v19 = vld [vmem:[#allocation8 + $0x40] sm:$0xff]  ;;  %v802_v17 = vld [vmem:[#allocation8 + $0x48] sm:$0xff] }
 0x2c8   :  { %1441 = vmatpush3.bf16.msra.mxu1 %v1438_v25  ;;  %v784_v20 = vpop.xlane.xlu1 %783 }
 0x2c9   :  { %v1069_v29 = vadd.f32 %v1068_v2, %v1062_v44  ;;  %vm862_vm2 = vcmp.eq.s32.totalorder %v472_v48, %v2381_v36  ;;  %v785_v37 = vrot.slane %v784_v20, 4 }
 0x2ca   :  { %v1223_v28 = vsel %vm862_vm2, 1.0, %v2375_v6 }
 0x2cb   :  { %v1063_v60 = vmul.f32 %v1247_v27, %v1223_v28  ;;  %v786_v57 = vadd.f32 %v785_v37, %v784_v20  ;;  %v886_v11 = vmul.f32 %v1223_v28, %v198_v59  ;;  %v803_v20 = vld [vmem:[#allocation8 + $0x50] sm:$0xff]  ;;  %v804_v37 = vld [vmem:[#allocation8 + $0x58] sm:$0xff]  ;;  %v805_v28 = vld [vmem:[#allocation8 + $0x60] sm:$0xff] }
 0x2cd   :  { %v1070_v9 = vadd.f32 %v1069_v29, %v1063_v60  ;;  %v787_v46 = vrot.slane %v786_v57, 2  ;;  %v1442_v30 = vpack.c.bf16 %v886_v11, %v885_v16  ;;  %v806_v11 = vld [vmem:[#allocation8 + $0x68] sm:$0xff] }
 0x2cf   :  { %v1071_v50 = vrot.slane %v1070_v9, 4  ;;  %1443 = vmatprep.subr.bf16.mxu1 %v1442_v30  ;;  %v788_v13 = vadd.f32 %v787_v46, %v786_v57 }
 0x2d0   :  { %1445 = vmatpush3.bf16.msra.mxu1 %v1442_v30 }
 0x2d1   :  { %v1072_v21 = vadd.f32 %v1071_v50, %v1070_v9  ;;  %v789_v4 = vrot.slane %v788_v13, 1  ;;  %v807_v50 = vld [vmem:[#allocation8 + $0x70] sm:$0xff] }
 0x2d3   :  { %v1073_v41 = vrot.slane %v1072_v21, 2  ;;  %1391 = vmatmul.mubr.msk.f32.vlgmr.msra.gmra.mrb[0].mxu1 %vm574_vm0, %v2087_v35  ;;  %v790_v58 = vadd.f32 %v789_v4, %v788_v13  ;;  %v794_v35 = vld [vmem:[#allocation8 + $0x8] sm:$0xff] }
 0x2d4   :  { %1393 = vmatprep.mubr.msk.f32.mxu1 %vm574_vm0, %v2094_v39  ;;  %v793_v39 = vld [vmem:[#allocation8] sm:$0xff] }
 0x2d5   :  { %v1074_v12 = vadd.f32 %v1073_v41, %v1072_v21  ;;  %1446 = vpush %v790_v58  ;;  %v808_v41 = vld [vmem:[#allocation8 + $0x78] sm:$0xff] }
 0x2d7   :  { %v1075_v22 = vrot.slane %v1074_v12, 1  ;;  %1394 = vmatmul.mubr.msk.f32.gmra.mrb[2].mxu1 %vm574_vm0, %v2101_v18 }
 0x2d8   :  { %1396 = vmatprep.mubr.msk.f32.mxu1 %vm574_vm0, %v2106_v40 }
 0x2d9   :  { %v1076_v42 = vadd.f32 %v1075_v22, %v1074_v12 }
 0x2db   :  { %v1153_v52 = vadd.f32 %v1152_v24, %v1076_v42  ;;  %1397 = vmatmul.mubr.msk.f32.gmra.mrb[4].mxu1 %vm574_vm0, %v2113_v3 }
 0x2dc   :  { %1399 = vmatprep.mubr.msk.f32.mxu1 %vm574_vm0, %v2118_v32 }
 0x2dd   :  { %1154 = vst [vmem:[%s2351_s5] sm:$0x1] %v1153_v52 }
 0x2df   :  { %1400 = vmatmul.mubr.msk.f32.gmra.mrb[6].mxu1 %vm574_vm0, %v2125_v5  ;;  %v795_v5 = vld [vmem:[#allocation8 + $0x10] sm:$0xff] }
 0x2e0   :  { %1402 = vmatprep.mubr.msk.f32.mxu1 %vm574_vm0, %v2130_v43 }
 0x2e3   :  { %1403 = vmatmul.mubr.msk.f32.gmra.mrb[8].mxu1 %vm574_vm0, %v2137_v14 }
 0x2e4   :  { %1405 = vmatprep.mubr.msk.f32.mxu1 %vm574_vm0, %v2142_v53  ;;  %v796_v53 = vld [vmem:[#allocation8 + $0x18] sm:$0xff] }
 0x2e7   :  { %1406 = vmatmul.mubr.msk.f32.gmra.mrb[10].mxu1 %vm574_vm0, %v2149_v7 }
 0x2e8   :  { %1408 = vmatprep.mubr.msk.f32.mxu1 %vm574_vm0, %v2154_v45 }
 0x2eb   :  { %1409 = vmatmul.mubr.msk.f32.gmra.mrb[12].mxu1 %vm574_vm0, %v2161_v55 }
 0x2ec   :  { %1411 = vmatprep.mubr.msk.f32.mxu1 %vm574_vm0, %v2166_v8  ;;  %v798_v8 = vld [vmem:[#allocation8 + $0x28] sm:$0xff] }
 0x2ef   :  { %1412 = vmatmul.mubr.msk.f32.gmra.mrb[14].mxu1 %vm574_vm0, %v2172_v54  ;;  %vm1081_vm0 = vcmask 0  }
 0x2f0   :  { %1082 = vst.msk [vmem:[#allocation2] sm:$0x1] %vm1081_vm0, %v2375_v6 }
 0x306   :  { %s1447_s13 = spop %1446 }
 0x349   :  { %v1352_v18 = vpop.f32.mrb[0].mxu0 }
 0x34a   :  { %v810_v40 = vmul.f32 %v1352_v18, %v794_v35  ;;  %v689_v3 = vpop.f32.mrb[1].mxu0 }
 0x34b   :  { %v809_v32 = vmul.f32 %v793_v39, %v689_v3 }
 0x34d   :  { %v825_v43 = vadd.f32 %v810_v40, %v809_v32  ;;  %v1355_v14 = vpop.f32.mrb[2].mxu0 }
 0x34e   :  { %v699_v7 = vpop.f32.mrb[3].mxu0  ;;  %v812_v55 = vmul.f32 %v1355_v14, %v796_v53 }
 0x34f   :  { %v811_v45 = vmul.f32 %v795_v5, %v699_v7 }
 0x351   :  { %v826_v34 = vadd.f32 %v825_v43, %v811_v45  ;;  %v1358_v49 = vpop.f32.mrb[4].mxu0 }
 0x352   :  { %v709_v15 = vpop.f32.mrb[5].mxu0  ;;  %v814_v31 = vmul.f32 %v1358_v49, %v798_v8 }
 0x353   :  { %v813_v47 = vmul.f32 %v797_v63, %v709_v15  ;;  %v827_v54 = vadd.f32 %v826_v34, %v812_v55 }
 0x355   :  { %v828_v51 = vadd.f32 %v827_v54, %v813_v47  ;;  %v1361_v26 = vpop.f32.mrb[6].mxu0 }
 0x356   :  { %v719_v33 = vpop.f32.mrb[7].mxu0  ;;  %v816_v25 = vmul.f32 %v1361_v26, %v800_v0 }
 0x357   :  { %v815_v62 = vmul.f32 %v799_v61, %v719_v33  ;;  %v829_v2 = vadd.f32 %v828_v51, %v814_v31  ;;  %v792_v51 = vstv %s1447_s13 }
 0x358   :  { %v850_v0 = vmul.f32 0.6, %v792_v51 }
 0x359   :  { %v830_v56 = vadd.f32 %v829_v2, %v815_v62  ;;  %v1364_v38 = vpop.f32.mrb[8].mxu0 }
 0x35a   :  { %v729_v36 = vpop.f32.mrb[9].mxu0  ;;  %v818_v1 = vmul.f32 %v1364_v38, %v802_v17 }
 0x35b   :  { %v817_v44 = vmul.f32 %v801_v19, %v729_v36  ;;  %v831_v48 = vadd.f32 %v830_v56, %v816_v25  ;;  %v1100_v19 = vld [vmem:[#allocation2] sm:$0x1] }
 0x35d   :  { %v832_v23 = vadd.f32 %v831_v48, %v817_v44  ;;  %v1367_v29 = vpop.f32.mrb[10].mxu0 }
 0x35e   :  { %v739_v10 = vpop.f32.mrb[11].mxu0  ;;  %v820_v60 = vmul.f32 %v1367_v29, %v804_v37 }
 0x35f   :  { %v819_v59 = vmul.f32 %v803_v20, %v739_v10  ;;  %v833_v27 = vadd.f32 %v832_v23, %v818_v1 }
 0x361   :  { %v834_v57 = vadd.f32 %v833_v27, %v819_v59  ;;  %v1370_v16 = vpop.f32.mrb[12].mxu0 }
 0x362   :  { %v749_v9 = vpop.f32.mrb[13].mxu0  ;;  %v822_v13 = vmul.f32 %v1370_v16, %v806_v11 }
 0x363   :  { %v821_v46 = vmul.f32 %v805_v28, %v749_v9  ;;  %v835_v30 = vadd.f32 %v834_v57, %v820_v60 }
 0x365   :  { %v836_v21 = vadd.f32 %v835_v30, %v821_v46  ;;  %v1373_v4 = vpop.f32.mrb[14].mxu0 }
 0x366   :  { %v759_v58 = vpop.f32.mrb[15].mxu0  ;;  %v824_v24 = vmul.f32 %v1373_v4, %v808_v41 }
 0x367   :  { %v823_v12 = vmul.f32 %v807_v50, %v759_v58  ;;  %v837_v22 = vadd.f32 %v836_v21, %v822_v13 }
 0x369   :  { %v838_v42 = vadd.f32 %v837_v22, %v823_v12 }
 0x36b   :  { %v839_v52 = vadd.f32 %v838_v42, %v824_v24 }
 0x36d   :  { %840 = vadd.xlane.f32.xlu1 %v839_v52 }
 0x3a6   :  { %v1392_v35 = vpop.f32.mrb[0].mxu1 }
 0x3a7   :  { %v953_v39 = vpop.f32.mrb[1].mxu1  ;;  %1137 = vst [vmem:[%s2350_s4 + $0x8] sm:$0xff] %v1392_v35 }
 0x3a8   :  { %1136 = vst [vmem:[%s2350_s4] sm:$0xff] %v953_v39 }
 0x3aa   :  { %v1395_v18 = vpop.f32.mrb[2].mxu1 }
 0x3ab   :  { %v963_v40 = vpop.f32.mrb[3].mxu1  ;;  %1139 = vst [vmem:[%s2350_s4 + $0x18] sm:$0xff] %v1395_v18 }
 0x3ac   :  { %1138 = vst [vmem:[%s2350_s4 + $0x10] sm:$0xff] %v963_v40 }
 0x3ae   :  { %v1398_v3 = vpop.f32.mrb[4].mxu1 }
 0x3af   :  { %v973_v32 = vpop.f32.mrb[5].mxu1  ;;  %1141 = vst [vmem:[%s2350_s4 + $0x28] sm:$0xff] %v1398_v3 }
 0x3b0   :  { %1140 = vst [vmem:[%s2350_s4 + $0x20] sm:$0xff] %v973_v32 }
 0x3b2   :  { %v1401_v5 = vpop.f32.mrb[6].mxu1 }
 0x3b3   :  { %v983_v43 = vpop.f32.mrb[7].mxu1  ;;  %1143 = vst [vmem:[%s2350_s4 + $0x38] sm:$0xff] %v1401_v5 }
 0x3b4   :  { %1142 = vst [vmem:[%s2350_s4 + $0x30] sm:$0xff] %v983_v43 }
 0x3b6   :  { %v1404_v14 = vpop.f32.mrb[8].mxu1 }
 0x3b7   :  { %v993_v53 = vpop.f32.mrb[9].mxu1  ;;  %1145 = vst [vmem:[%s2350_s4 + $0x48] sm:$0xff] %v1404_v14 }
 0x3b8   :  { %1144 = vst [vmem:[%s2350_s4 + $0x40] sm:$0xff] %v993_v53 }
 0x3ba   :  { %v1407_v7 = vpop.f32.mrb[10].mxu1 }
 0x3bb   :  { %v1003_v45 = vpop.f32.mrb[11].mxu1  ;;  %1147 = vst [vmem:[%s2350_s4 + $0x58] sm:$0xff] %v1407_v7 }
 0x3bc   :  { %1146 = vst [vmem:[%s2350_s4 + $0x50] sm:$0xff] %v1003_v45 }
 0x3be   :  { %v1410_v63 = vpop.f32.mrb[12].mxu1 }
 0x3bf   :  { %v1013_v55 = vpop.f32.mrb[13].mxu1  ;;  %1149 = vst [vmem:[%s2350_s4 + $0x68] sm:$0xff] %v1410_v63 }
 0x3c0   :  { %1148 = vst [vmem:[%s2350_s4 + $0x60] sm:$0xff] %v1013_v55 }
 0x3c2   :  { %v1413_v34 = vpop.f32.mrb[14].mxu1 }
 0x3c3   :  { %v1023_v49 = vpop.f32.mrb[15].mxu1  ;;  %1151 = vst [vmem:[%s2350_s4 + $0x78] sm:$0xff] %v1413_v34 }
 0x3c4   :  { %1150 = vst [vmem:[%s2350_s4 + $0x70] sm:$0xff] %v1023_v49  ;;  %s1610_s4 = smov [#allocation9]  }
 0x3c5   :  { %s1166_s15 = sshll.u32 %s1610_s4, 4  ;;  %s1167_s15 = int_to_ptr.vmem [resolvable:$true] %s1166_s15 }
 0x3c6   :  { %s1574_s16 = scalar_lea.vmem %s1167_s15, 16  ;;  %s1578_s1 = scalar_lea.vmem %s1167_s15, 32 }
 0x3c7   :  { %p1575_p10 = scmp.ne.s32.totalorder %s1167_s15, %s1574_s16  ;;  %p1579_p11 = scmp.lt.s32.totalorder %s1167_s15, %s1167_s15 }
 0x3c8   :  { %p1580_p12 = scmp.lt.s32.totalorder %s1578_s1, %s1574_s16 }
 0x3ca   :  { %p1581_p13 = por %p1580_p12, %p1579_p11 }
 0x3cc   :  { %p1582_p0 = pnand %p1581_p13, %p1575_p10 }
 0x3fa   :  { %v841_v8 = vpop.xlane.xlu1 %840 }
 0x3fb   :  { %v842_v15 = vrot.slane %v841_v8, 4 }
 0x3fd   :  { %v843_v47 = vadd.f32 %v842_v15, %v841_v8 }
 0x3ff   :  { %v844_v54 = vrot.slane %v843_v47, 2 }
 0x401   :  { %v845_v61 = vadd.f32 %v844_v54, %v843_v47 }
 0x403   :  { %v846_v6 = vrot.slane %v845_v61, 1 }
 0x405   :  { %v847_v31 = vadd.f32 %v846_v6, %v845_v61 }
 0x407   :  { %1448 = vpush %v847_v31 }
 0x438   :  { %s1449_s14 = spop %1448 }
 0x439   :  { %v849_v26 = vstv %s1449_s14 }
 0x43a   :  { %v851_v33 = vmul.f32 0.4, %v849_v26 }
 0x43c   :  { %v852_v62 = vadd.f32 %v851_v33, %v850_v0 }
 0x43e   :  { %v853_v2 = vsub.f32 0.0, %v852_v62 }
 0x440   :  { %v854_v25 = vmul.f32 0.015625, %v853_v2 }
 0x442   :  { %v1101_v56 = vadd.f32 %v1100_v19, %v854_v25 }
 0x444   :  { %1103 = vst.msk [vmem:[#allocation2] sm:$0x1] %vm1081_vm0, %v1101_v56 }
 0x44b   :  { %v1158_v38 = vld [vmem:[#allocation2] sm:$0x1] }
 0x44c   :  { %1159 = vst.msk [vmem:[#allocation9] sm:$0x1] %vm1081_vm0, %v1158_v38 }
 0x44d   :  { %1585 = shalt.err (!%p1582_p0)
}
 0x44e   :  { %s1586_s19 = scalar_lea.hbm %s2349_s3, 16 }
 0x44f   :  { %p1587_p1 = scmp.ne.s32.totalorder %s2349_s3, %s1586_s19  ;;  %p1590_p2 = scmp.lt.u32.totalorder %s1586_s19, %s2349_s3 }
 0x451   :  { %p1592_p3 = pnand %p1590_p2, %p1587_p1 }
 0x453   :  { %1595 = shalt.err (!%p1592_p3)
}
 0x454   :  { %1169 = dma.vmem_to_hbm [thread:$0]  %s1167_s15, 16, %s2349_s3, [#allocation5]  }
 0x455   :  { %1600 = dma.done.wait [#allocation5], 16  }
 0x456   :  { %1601 = vsyncadd [#allocation5], 4294967280 }
 0x457   :  { %1181 = vsyncpa [#allocation4], 1 }
 0x458   :  { %1182 = vsyncpa [#allocation7], 1 }
 0x459   :  { %1183 = vsyncpa [#allocation5], 1 }

</bundles_post_ra>
